<compile_context>
chip_gen: v5e
topology: v5e:2x2
jax: 0.10.0
libtpu: 0.0.40
codegen_flags: <defaults>
</compile_context>

<pallas_src>
import jax
import jax.numpy as jnp
from jax.experimental import pallas as pl
from jax.experimental.pallas import tpu as pltpu

CIN = 64        # fixed by the module (conv1 in_channels)
COUT = 3        # conv1 out_channels
COUT_PAD = 8    # padded out channels (one sublane group); padded lanes are 0


# ----------------------------------------------------------------------------
# Fused Pallas kernel: reflect-pad(1) + 3x3 conv + bias for one batch element.
# ----------------------------------------------------------------------------
def _decoder1_kernel(x_ref, w_ref, b_ref, o_ref):
    # x_ref: [H, W, Cin]             (unpadded input, bf16)
    # w_ref: [3, 3, Cin, COUT_PAD]   (HWIO taps, bf16, zero-padded past COUT)
    # b_ref: [1, COUT_PAD]           (f32, zero-padded past COUT)
    # o_ref: [H, W, COUT_PAD]        (f32, narrow output)
    H, W, Cin = x_ref.shape
    Cout_p = o_ref.shape[-1]

    x = x_ref[...]
    w = w_ref[...]

    # Reflection pad by 1 on H and W, entirely in VMEM.
    # Row/col -1 reflects to index 1; row/col H reflects to index H-2.
    xr = jnp.concatenate([x[1:2], x, x[H - 2:H - 1]], axis=0)            # [H+2, W,   Cin]
    xp = jnp.concatenate([xr[:, 1:2], xr, xr[:, W - 2:W - 1]], axis=1)   # [H+2, W+2, Cin]

    # Direct conv as 9 MXU dots accumulated in f32: no lane-axis concat,
    # no im2col scratch.  Each shifted window is a sublane-only slice.
    acc = jnp.zeros((H * W, Cout_p), jnp.float32)
    for kh in range(3):
        for kw in range(3):
            patch = xp[kh:kh + H, kw:kw + W, :].reshape(H * W, Cin)      # [H*W, Cin]
            acc = acc + jnp.dot(patch, w[kh, kw],
                                preferred_element_type=jnp.float32)      # [H*W, Cout_p]

    acc = acc + b_ref[...]
    o_ref[...] = acc.reshape(H, W, Cout_p)


# ----------------------------------------------------------------------------
# One-time parameter packing (hoisted out of the per-call forward).
# ----------------------------------------------------------------------------
def pack_params(params):
    w = params["w1"]                                   # [3, 3, Cin, Cout] HWIO
    b = params["b1"]                                   # [Cout]
    cout = w.shape[-1]
    w_p = jnp.pad(w, ((0, 0), (0, 0), (0, 0), (0, COUT_PAD - cout))).astype(jnp.bfloat16)
    b_p = jnp.pad(b, (0, COUT_PAD - cout)).reshape(1, COUT_PAD).astype(jnp.float32)
    return w_p, b_p


# ----------------------------------------------------------------------------
# Public wrapper: NCHW in / NCHW out (PyTorch convention).  Jitted so the
# input transpose+cast and the output slice+transpose each fuse into one pass.
# ----------------------------------------------------------------------------
@jax.jit
def decoder1_forward(x_nchw, w_packed, b_packed):
    N, Cin, H, W = x_nchw.shape
    assert Cin == CIN and H >= 2 and W >= 2

    x = jnp.transpose(x_nchw, (0, 2, 3, 1)).astype(jnp.bfloat16)   # NHWC, bf16

    out = pl.pallas_call(
        _decoder1_kernel,
        out_shape=jax.ShapeDtypeStruct((N, H, W, COUT_PAD), jnp.float32),
        grid=(N,),
        in_specs=[
            pl.BlockSpec((None, H, W, Cin), lambda n: (n, 0, 0, 0)),
            pl.BlockSpec((3, 3, Cin, COUT_PAD), lambda n: (0, 0, 0, 0)),
            pl.BlockSpec((1, COUT_PAD), lambda n: (0, 0)),
        ],
        out_specs=pl.BlockSpec((None, H, W, COUT_PAD), lambda n: (n, 0, 0, 0)),
        compiler_params=pltpu.CompilerParams(dimension_semantics=("parallel",)),
    )(x, w_packed, b_packed)

    out = out[..., :COUT]                       # drop padded channels (6 KiB)
    return jnp.transpose(out, (0, 3, 1, 2))     # -> NCHW (fuses with the slice)


# ----------------------------------------------------------------------------
# Pure-JAX reference (same math, same bf16 input rounding) for correctness.
# ----------------------------------------------------------------------------
def _ref_forward(x_nchw, params):
    x = jnp.transpose(x_nchw, (0, 2, 3, 1))
    x = x.astype(jnp.bfloat16).astype(jnp.float32)
    w = params["w1"].astype(jnp.bfloat16).astype(jnp.float32)
    xp = jnp.pad(x, ((0, 0), (1, 1), (1, 1), (0, 0)), mode="reflect")
    y = jax.lax.conv_general_dilated(
        xp, w, (1, 1), "VALID",
        dimension_numbers=("NHWC", "HWIO", "NHWC"),
        precision=jax.lax.Precision.HIGHEST,
    )
    y = y + params["b1"]
    return jnp.transpose(y, (0, 3, 1, 2))


# ----------------------------------------------------------------------------
# Deterministic parameter init (shapes from the PyTorch module __init__).
# ----------------------------------------------------------------------------
def init_params(key):
    k1, k2 = jax.random.split(key)
    scale = 1.0 / jnp.sqrt(CIN * 9.0)
    return {
        # HWIO layout: [3, 3, Cin, Cout].
        "w1": scale * jax.random.normal(k1, (3, 3, CIN, COUT), jnp.float32),
        "b1": 0.01 * jax.random.normal(k2, (COUT,), jnp.float32),
    }


if __name__ == "__main__":
    key = jax.random.PRNGKey(0)
    kx, kp = jax.random.split(key)

    # Module-consistent small shapes: N=2, Cin=64 (fixed by conv1), 16x16 spatial.
    x = jax.random.normal(kx, (2, 64, 16, 16), jnp.float32)
    params = init_params(kp)
    w_packed, b_packed = pack_params(params)

    out = jax.block_until_ready(decoder1_forward(x, w_packed, b_packed))
    assert out.shape == (2, 3, 16, 16), out.shape

    ref = jax.block_until_ready(_ref_forward(x, params))
    max_err = float(jnp.max(jnp.abs(out - ref)))
    assert jnp.allclose(out, ref, rtol=1e-3, atol=1e-3), max_err

    print("KERNEL_OK")
</pallas_src>

<mosaic_0001>
module attributes {stable_mosaic.version = 11 : i64} {
  func.func @_decoder1_kernel(%arg0: i32, %arg1: memref<1x16x16x64xbf16, #tpu.memory_space<vmem>>, %arg2: memref<3x3x64x8xbf16, #tpu.memory_space<vmem>>, %arg3: memref<1x8xf32, #tpu.memory_space<vmem>>, %arg4: memref<1x16x16x8xf32, #tpu.memory_space<vmem>>) attributes {dimension_semantics = [#tpu.dimension_semantics<parallel>], iteration_bounds = array<i64: 2>, scalar_prefetch = 0 : i64, scratch_operands = 0 : i64, tpu.core_type = #tpu.core_type<tc>, window_params = [{transform_indices = @transform_0, window_bounds = array<i64: 1, 16, 16, 64>}, {pipeline_mode = #tpu.pipeline_mode<synchronous>, transform_indices = @transform_1, window_bounds = array<i64: 3, 3, 64, 8>}, {pipeline_mode = #tpu.pipeline_mode<synchronous>, transform_indices = @transform_2, window_bounds = array<i64: 1, 8>}, {transform_indices = @transform_3, window_bounds = array<i64: 1, 16, 16, 8>}]} {
    %c0 = arith.constant 0 : index
    %c0_0 = arith.constant 0 : index
    %c0_1 = arith.constant 0 : index
    %c0_2 = arith.constant 0 : index
    %0 = vector.load %arg1[%c0, %c0_0, %c0_1, %c0_2] : memref<1x16x16x64xbf16, #tpu.memory_space<vmem>>, vector<1x16x16x64xbf16>
    %1 = vector.shape_cast %0 : vector<1x16x16x64xbf16> to vector<16x16x64xbf16>
    %c0_3 = arith.constant 0 : index
    %c0_4 = arith.constant 0 : index
    %c0_5 = arith.constant 0 : index
    %c0_6 = arith.constant 0 : index
    %2 = vector.load %arg2[%c0_3, %c0_4, %c0_5, %c0_6] : memref<3x3x64x8xbf16, #tpu.memory_space<vmem>>, vector<3x3x64x8xbf16>
    %3 = vector.extract_strided_slice %1 {offsets = [1, 0, 0], sizes = [1, 16, 64], strides = [1, 1, 1]} : vector<16x16x64xbf16> to vector<1x16x64xbf16>
    %4 = vector.extract_strided_slice %1 {offsets = [14, 0, 0], sizes = [1, 16, 64], strides = [1, 1, 1]} : vector<16x16x64xbf16> to vector<1x16x64xbf16>
    %5 = tpu.concatenate %3, %1, %4 in 0 : vector<1x16x64xbf16>, vector<16x16x64xbf16>, vector<1x16x64xbf16> -> vector<18x16x64xbf16>
    %6 = vector.extract_strided_slice %5 {offsets = [0, 1, 0], sizes = [18, 1, 64], strides = [1, 1, 1]} : vector<18x16x64xbf16> to vector<18x1x64xbf16>
    %7 = vector.extract_strided_slice %5 {offsets = [0, 14, 0], sizes = [18, 1, 64], strides = [1, 1, 1]} : vector<18x16x64xbf16> to vector<18x1x64xbf16>
    %8 = tpu.concatenate %6, %5, %7 in 1 : vector<18x1x64xbf16>, vector<18x16x64xbf16>, vector<18x1x64xbf16> -> vector<18x18x64xbf16>
    %cst = arith.constant 0.000000e+00 : f32
    %9 = vector.broadcast %cst : f32 to vector<256x8xf32>
    %10 = vector.extract_strided_slice %8 {offsets = [0, 0, 0], sizes = [16, 16, 64], strides = [1, 1, 1]} : vector<18x18x64xbf16> to vector<16x16x64xbf16>
    %11 = vector.shape_cast %10 : vector<16x16x64xbf16> to vector<256x64xbf16>
    %12 = vector.extract_strided_slice %2 {offsets = [0, 0, 0, 0], sizes = [1, 1, 64, 8], strides = [1, 1, 1, 1]} : vector<3x3x64x8xbf16> to vector<1x1x64x8xbf16>
    %13 = vector.shape_cast %12 : vector<1x1x64x8xbf16> to vector<64x8xbf16>
    %cst_7 = arith.constant dense<0.000000e+00> : vector<256x8xf32>
    %14 = tpu.matmul %11, %13, %cst_7 {dimension_numbers = #tpu.dot_dimension_numbers<[1], [0], [0], [1], [0, 0, 1, 1], [], []>} : vector<256x64xbf16>, vector<64x8xbf16>, vector<256x8xf32> -> vector<256x8xf32>
    %15 = arith.addf %9, %14 : vector<256x8xf32>
    %16 = vector.extract_strided_slice %8 {offsets = [0, 1, 0], sizes = [16, 16, 64], strides = [1, 1, 1]} : vector<18x18x64xbf16> to vector<16x16x64xbf16>
    %17 = vector.shape_cast %16 : vector<16x16x64xbf16> to vector<256x64xbf16>
    %18 = vector.extract_strided_slice %2 {offsets = [0, 1, 0, 0], sizes = [1, 1, 64, 8], strides = [1, 1, 1, 1]} : vector<3x3x64x8xbf16> to vector<1x1x64x8xbf16>
    %19 = vector.shape_cast %18 : vector<1x1x64x8xbf16> to vector<64x8xbf16>
    %cst_8 = arith.constant dense<0.000000e+00> : vector<256x8xf32>
    %20 = tpu.matmul %17, %19, %cst_8 {dimension_numbers = #tpu.dot_dimension_numbers<[1], [0], [0], [1], [0, 0, 1, 1], [], []>} : vector<256x64xbf16>, vector<64x8xbf16>, vector<256x8xf32> -> vector<256x8xf32>
    %21 = arith.addf %15, %20 : vector<256x8xf32>
    %22 = vector.extract_strided_slice %8 {offsets = [0, 2, 0], sizes = [16, 16, 64], strides = [1, 1, 1]} : vector<18x18x64xbf16> to vector<16x16x64xbf16>
    %23 = vector.shape_cast %22 : vector<16x16x64xbf16> to vector<256x64xbf16>
    %24 = vector.extract_strided_slice %2 {offsets = [0, 2, 0, 0], sizes = [1, 1, 64, 8], strides = [1, 1, 1, 1]} : vector<3x3x64x8xbf16> to vector<1x1x64x8xbf16>
    %25 = vector.shape_cast %24 : vector<1x1x64x8xbf16> to vector<64x8xbf16>
    %cst_9 = arith.constant dense<0.000000e+00> : vector<256x8xf32>
    %26 = tpu.matmul %23, %25, %cst_9 {dimension_numbers = #tpu.dot_dimension_numbers<[1], [0], [0], [1], [0, 0, 1, 1], [], []>} : vector<256x64xbf16>, vector<64x8xbf16>, vector<256x8xf32> -> vector<256x8xf32>
    %27 = arith.addf %21, %26 : vector<256x8xf32>
    %28 = vector.extract_strided_slice %8 {offsets = [1, 0, 0], sizes = [16, 16, 64], strides = [1, 1, 1]} : vector<18x18x64xbf16> to vector<16x16x64xbf16>
    %29 = vector.shape_cast %28 : vector<16x16x64xbf16> to vector<256x64xbf16>
    %30 = vector.extract_strided_slice %2 {offsets = [1, 0, 0, 0], sizes = [1, 1, 64, 8], strides = [1, 1, 1, 1]} : vector<3x3x64x8xbf16> to vector<1x1x64x8xbf16>
    %31 = vector.shape_cast %30 : vector<1x1x64x8xbf16> to vector<64x8xbf16>
    %cst_10 = arith.constant dense<0.000000e+00> : vector<256x8xf32>
    %32 = tpu.matmul %29, %31, %cst_10 {dimension_numbers = #tpu.dot_dimension_numbers<[1], [0], [0], [1], [0, 0, 1, 1], [], []>} : vector<256x64xbf16>, vector<64x8xbf16>, vector<256x8xf32> -> vector<256x8xf32>
    %33 = arith.addf %27, %32 : vector<256x8xf32>
    %34 = vector.extract_strided_slice %8 {offsets = [1, 1, 0], sizes = [16, 16, 64], strides = [1, 1, 1]} : vector<18x18x64xbf16> to vector<16x16x64xbf16>
    %35 = vector.shape_cast %34 : vector<16x16x64xbf16> to vector<256x64xbf16>
    %36 = vector.extract_strided_slice %2 {offsets = [1, 1, 0, 0], sizes = [1, 1, 64, 8], strides = [1, 1, 1, 1]} : vector<3x3x64x8xbf16> to vector<1x1x64x8xbf16>
    %37 = vector.shape_cast %36 : vector<1x1x64x8xbf16> to vector<64x8xbf16>
    %cst_11 = arith.constant dense<0.000000e+00> : vector<256x8xf32>
    %38 = tpu.matmul %35, %37, %cst_11 {dimension_numbers = #tpu.dot_dimension_numbers<[1], [0], [0], [1], [0, 0, 1, 1], [], []>} : vector<256x64xbf16>, vector<64x8xbf16>, vector<256x8xf32> -> vector<256x8xf32>
    %39 = arith.addf %33, %38 : vector<256x8xf32>
    %40 = vector.extract_strided_slice %8 {offsets = [1, 2, 0], sizes = [16, 16, 64], strides = [1, 1, 1]} : vector<18x18x64xbf16> to vector<16x16x64xbf16>
    %41 = vector.shape_cast %40 : vector<16x16x64xbf16> to vector<256x64xbf16>
    %42 = vector.extract_strided_slice %2 {offsets = [1, 2, 0, 0], sizes = [1, 1, 64, 8], strides = [1, 1, 1, 1]} : vector<3x3x64x8xbf16> to vector<1x1x64x8xbf16>
    %43 = vector.shape_cast %42 : vector<1x1x64x8xbf16> to vector<64x8xbf16>
    %cst_12 = arith.constant dense<0.000000e+00> : vector<256x8xf32>
    %44 = tpu.matmul %41, %43, %cst_12 {dimension_numbers = #tpu.dot_dimension_numbers<[1], [0], [0], [1], [0, 0, 1, 1], [], []>} : vector<256x64xbf16>, vector<64x8xbf16>, vector<256x8xf32> -> vector<256x8xf32>
    %45 = arith.addf %39, %44 : vector<256x8xf32>
    %46 = vector.extract_strided_slice %8 {offsets = [2, 0, 0], sizes = [16, 16, 64], strides = [1, 1, 1]} : vector<18x18x64xbf16> to vector<16x16x64xbf16>
    %47 = vector.shape_cast %46 : vector<16x16x64xbf16> to vector<256x64xbf16>
    %48 = vector.extract_strided_slice %2 {offsets = [2, 0, 0, 0], sizes = [1, 1, 64, 8], strides = [1, 1, 1, 1]} : vector<3x3x64x8xbf16> to vector<1x1x64x8xbf16>
    %49 = vector.shape_cast %48 : vector<1x1x64x8xbf16> to vector<64x8xbf16>
    %cst_13 = arith.constant dense<0.000000e+00> : vector<256x8xf32>
    %50 = tpu.matmul %47, %49, %cst_13 {dimension_numbers = #tpu.dot_dimension_numbers<[1], [0], [0], [1], [0, 0, 1, 1], [], []>} : vector<256x64xbf16>, vector<64x8xbf16>, vector<256x8xf32> -> vector<256x8xf32>
    %51 = arith.addf %45, %50 : vector<256x8xf32>
    %52 = vector.extract_strided_slice %8 {offsets = [2, 1, 0], sizes = [16, 16, 64], strides = [1, 1, 1]} : vector<18x18x64xbf16> to vector<16x16x64xbf16>
    %53 = vector.shape_cast %52 : vector<16x16x64xbf16> to vector<256x64xbf16>
    %54 = vector.extract_strided_slice %2 {offsets = [2, 1, 0, 0], sizes = [1, 1, 64, 8], strides = [1, 1, 1, 1]} : vector<3x3x64x8xbf16> to vector<1x1x64x8xbf16>
    %55 = vector.shape_cast %54 : vector<1x1x64x8xbf16> to vector<64x8xbf16>
    %cst_14 = arith.constant dense<0.000000e+00> : vector<256x8xf32>
    %56 = tpu.matmul %53, %55, %cst_14 {dimension_numbers = #tpu.dot_dimension_numbers<[1], [0], [0], [1], [0, 0, 1, 1], [], []>} : vector<256x64xbf16>, vector<64x8xbf16>, vector<256x8xf32> -> vector<256x8xf32>
    %57 = arith.addf %51, %56 : vector<256x8xf32>
    %58 = vector.extract_strided_slice %8 {offsets = [2, 2, 0], sizes = [16, 16, 64], strides = [1, 1, 1]} : vector<18x18x64xbf16> to vector<16x16x64xbf16>
    %59 = vector.shape_cast %58 : vector<16x16x64xbf16> to vector<256x64xbf16>
    %60 = vector.extract_strided_slice %2 {offsets = [2, 2, 0, 0], sizes = [1, 1, 64, 8], strides = [1, 1, 1, 1]} : vector<3x3x64x8xbf16> to vector<1x1x64x8xbf16>
    %61 = vector.shape_cast %60 : vector<1x1x64x8xbf16> to vector<64x8xbf16>
    %cst_15 = arith.constant dense<0.000000e+00> : vector<256x8xf32>
    %62 = tpu.matmul %59, %61, %cst_15 {dimension_numbers = #tpu.dot_dimension_numbers<[1], [0], [0], [1], [0, 0, 1, 1], [], []>} : vector<256x64xbf16>, vector<64x8xbf16>, vector<256x8xf32> -> vector<256x8xf32>
    %63 = arith.addf %57, %62 : vector<256x8xf32>
    %c0_16 = arith.constant 0 : index
    %c0_17 = arith.constant 0 : index
    %64 = vector.load %arg3[%c0_16, %c0_17] : memref<1x8xf32, #tpu.memory_space<vmem>>, vector<1x8xf32>
    %65 = vector.broadcast %64 : vector<1x8xf32> to vector<256x8xf32>
    %66 = arith.addf %63, %65 : vector<256x8xf32>
    %67 = vector.shape_cast %66 : vector<256x8xf32> to vector<16x16x8xf32>
    %c0_18 = arith.constant 0 : index
    %c0_19 = arith.constant 0 : index
    %c0_20 = arith.constant 0 : index
    %c0_21 = arith.constant 0 : index
    %68 = vector.load %arg4[%c0_18, %c0_19, %c0_20, %c0_21] : memref<1x16x16x8xf32, #tpu.memory_space<vmem>>, vector<1x16x16x8xf32>
    %69 = vector.shape_cast %68 : vector<1x16x16x8xf32> to vector<16x16x8xf32>
    %70 = vector.shape_cast %67 : vector<16x16x8xf32> to vector<1x16x16x8xf32>
    tpu.vector_store %arg4[%c0_18, %c0_19, %c0_20, %c0_21], %70 {strides = array<i32>} : memref<1x16x16x8xf32, #tpu.memory_space<vmem>>, vector<1x16x16x8xf32>,
    return
  }
  func.func @transform_0(%arg0: i32) -> (i32, i32, i32, i32) {
    %c0_i32 = arith.constant 0 : i32
    %c0_i32_0 = arith.constant 0 : i32
    %c0_i32_1 = arith.constant 0 : i32
    %c0_i32_2 = arith.constant 0 : i32
    return %arg0, %c0_i32, %c0_i32_0, %c0_i32_1 : i32, i32, i32, i32
  }
  func.func @transform_1(%arg0: i32) -> (i32, i32, i32, i32) {
    %c0_i32 = arith.constant 0 : i32
    %c0_i32_0 = arith.constant 0 : i32
    %c0_i32_1 = arith.constant 0 : i32
    %c0_i32_2 = arith.constant 0 : i32
    %c0_i32_3 = arith.constant 0 : i32
    return %c0_i32, %c0_i32_0, %c0_i32_1, %c0_i32_2 : i32, i32, i32, i32
  }
  func.func @transform_2(%arg0: i32) -> (i32, i32) {
    %c0_i32 = arith.constant 0 : i32
    %c0_i32_0 = arith.constant 0 : i32
    %c0_i32_1 = arith.constant 0 : i32
    return %c0_i32, %c0_i32_0 : i32, i32
  }
  func.func @transform_3(%arg0: i32) -> (i32, i32, i32, i32) {
    %c0_i32 = arith.constant 0 : i32
    %c0_i32_0 = arith.constant 0 : i32
    %c0_i32_1 = arith.constant 0 : i32
    %c0_i32_2 = arith.constant 0 : i32
    return %arg0, %c0_i32, %c0_i32_0, %c0_i32_1 : i32, i32, i32, i32
  }
}

</mosaic_0001>

<bundles_post_ra>
// kernel: decoder1_forward.1
= control target key start
LH: loop header
LB: loop body
LE: loop exit
PB: predicated region body
PF: predicated region fallthrough
CT: control target
= control target key end

     0   :  { %s2944_s12 = smov 0   ;;  %s3973_s0 = inlined_call_operand.vmem [shape: bf16[2,16,16,64], index: 0, kind: input, shape index: {}]   ;;  %s3974_s1 = inlined_call_operand.vmem [shape: bf16[3,3,64,8], index: 1, kind: input, shape index: {}]   ;;  %s3975_s2 = inlined_call_operand.vmem [shape: f32[1,8], index: 2, kind: input, shape index: {}]   ;;  %s3976_s3 = inlined_call_operand.vmem [shape: f32[2,16,16,8], index: 3, kind: output, shape index: {}]  }
   0x1 LB: > { %s2479_s13 = sadd.s32 4294967295, %s2922_s12   ;;  %p2483_p0 = scmp.ge.s32.totalorder %s2922_s12, 1  ;;  %s2922_s12 = sphi %s2944_s12, %s13_s12  }
   0x2   : > { %p137_p1 = scmp.lt.s32.totalorder %s2922_s12, 3 }
   0x4   : > { %p138_p2 = pnand %p2483_p0, %p137_p1 }
   0x6   : > { %141 = sbr.rel (%p138_p2) target bundleno = 753 (0x2f1), region = 32 }
   0xb   : > { %v2787_v0 = vld [vmem:[%s3974_s1 + $0x38] sm:$0xff]  ;;  %p161_p3 = scmp.lt.s32.totalorder %s2479_s13, 1  ;;  %v2786_v1 = vld [vmem:[%s3974_s1 + $0x30] sm:$0xff]  ;;  %v2785_v2 = vld [vmem:[%s3974_s1 + $0x28] sm:$0xff]  ;;  %vm676_vm0 = vcmask 1040384   ;;  %vm916_vm4 = vcmask 523264  }
   0xc   : > { %2895 = vmatpush.bf16.msra.mxu1 %v2787_v0  ;;  %2896 = vmatpush.bf16.msra.mxu2 %v2787_v0  ;;  %vm677_vm1 = vsmask.f32 256  ;;  %vm711_vm2 = vsmask.f32 7424  ;;  %v2784_v18 = vld [vmem:[%s3974_s1 + $0x20] sm:$0xff]  ;;  %v2791_v32 = vld [vmem:[%s3974_s1 + $0x58] sm:$0xff] }
   0xd   : > { %s4071_s13 = smov (!%p161_p3, %s2479_s13), 1  ;;  %2897 = vmatpush.bf16.msra.mxu3 %v2787_v0  ;;  %966 = vmatpush.bf16.msra.mxu0 %v2787_v0  ;;  %vm2980_vm3 = vmand %vm676_vm0, %vm677_vm1  ;;  %v2795_v33 = vld [vmem:[%s3974_s1 + $0x78] sm:$0xff]  ;;  %v2790_v57 = vld [vmem:[%s3974_s1 + $0x50] sm:$0xff]  ;;  %vm1224_vm5 = vcmask 1046528   ;;  %vm2391_vm6 = vcmask 64512  }
   0xe   : > { %s2778_s18 = sshll.u32 %s4071_s13, 7  ;;  %v2783_v38 = vld [vmem:[%s3974_s1 + $0x18] sm:$0xff] }
   0xf   : > { %s2967_s23 = scalar_lea.vmem %s3973_s0, %s2778_s18  ;;  %v2799_v39 = vld [vmem:[%s3974_s1 + $0x98] sm:$0xff] }
  0x10   : > { %2898 = vmatpush.bf16.msra.mxu1 %v2786_v1  ;;  %2899 = vmatpush.bf16.msra.mxu2 %v2786_v1  ;;  %v2882_v3 = vld [vmem:[%s2967_s23 + $0x18] sm:$0xff]   ;;  %v2880_v44 = vld [vmem:[%s2967_s23 + $0x8] sm:$0xff]  }
  0x11   : > { %v2886_v4 = vld [vmem:[%s2967_s23 + $0x38] sm:$0xff]   ;;  %2900 = vmatpush.bf16.msra.mxu3 %v2786_v1  ;;  %967 = vmatpush.bf16.msra.mxu0 %v2786_v1  ;;  %v2830_v6 = vunpack.c.l.b16 %v2882_v3  ;;  %v2831_v7 = vunpack.c.h.b16 %v2882_v3  ;;  %v458_v8 = vshrl.u32 %v2882_v3, 16  ;;  %v461_v9 = vshll.u32 %v2882_v3, 16 }
  0x12   : > { %v2972_v5 = vld [vmem:[%s2967_s23 + $0x58] sm:$0xff]   ;;  %v2846_v10 = vunpack.c.l.b16 %v2886_v4  ;;  %v2847_v11 = vunpack.c.h.b16 %v2886_v4  ;;  %v486_v12 = vshrl.u32 %v2886_v4, 16  ;;  %v489_v13 = vshll.u32 %v2886_v4, 16 }
  0x13   : > { %v311_v14 = vpack.c.b16 %v2830_v6, %v2830_v6  ;;  %v460_v15 = vrot.slane %v458_v8, 7  ;;  %v583_v16 = vpack.c.b16 %v2831_v7, %v2831_v7  ;;  %v2862_v17 = vunpack.c.l.b16 %v2972_v5 }
  0x14   : > { %2901 = vmatpush.bf16.msra.mxu1 %v2785_v2  ;;  %2902 = vmatpush.bf16.msra.mxu2 %v2785_v2  ;;  %v315_v20 = vpack.c.b16 %v2846_v10, %v2846_v10  ;;  %v488_v21 = vrot.slane %v486_v12, 7  ;;  %v587_v22 = vpack.c.b16 %v2847_v11, %v2847_v11  ;;  %v2863_v23 = vunpack.c.h.b16 %v2972_v5 }
  0x15   : > { %2903 = vmatpush.bf16.msra.mxu3 %v2785_v2  ;;  %968 = vmatpush.bf16.msra.mxu0 %v2785_v2  ;;  %v334_v24 = vshrl.u32 %v311_v14, 16  ;;  %v463_v25 = vor.u32 %v461_v9, %v460_v15  ;;  %v609_v26 = vshll.u32 %v583_v16, 16  ;;  %v319_v27 = vpack.c.b16 %v2862_v17, %v2862_v17  ;;  %v2883_v2 = vld [vmem:[%s2967_s23 + $0x20] sm:$0xff]   ;;  %v2782_v16 = vld [vmem:[%s3974_s1 + $0x10] sm:$0xff] }
  0x16   : > { %v346_v28 = vshrl.u32 %v315_v20, 16  ;;  %v491_v29 = vor.u32 %v489_v13, %v488_v21  ;;  %v625_v30 = vshll.u32 %v587_v22, 16  ;;  %v514_v31 = vshrl.u32 %v2972_v5, 16  ;;  %v2798_v17 = vld [vmem:[%s3974_s1 + $0x90] sm:$0xff] }
  0x17   : > { %v611_v34 = vrot.slane %v609_v26, 3  ;;  %v2994_v35 = vsel %vm2980_vm3, %v334_v24, %v463_v25  ;;  %v358_v36 = vshrl.u32 %v319_v27, 16  ;;  %v517_v37 = vshll.u32 %v2972_v5, 16 }
  0x18   : > { %2904 = vmatpush.bf16.msra.mxu1 %v2784_v18  ;;  %2905 = vmatpush.bf16.msra.mxu2 %v2784_v18  ;;  %v749_v40 = vshrl.u32 %v2994_v35, 16  ;;  %v751_v41 = vshll.u32 %v2994_v35, 16  ;;  %v627_v42 = vrot.slane %v625_v30, 3  ;;  %v3007_v43 = vsel %vm2980_vm3, %v346_v28, %v491_v29 }
  0x19   : > { %4004 = vst [vmem:[#allocation2_spill] sm:$0xff] %v3007_v43  ;;  %2906 = vmatpush.bf16.msra.mxu3 %v2784_v18  ;;  %969 = vmatpush.bf16.msra.mxu0 %v2784_v18  ;;  %v3012_v45 = vsel %vm2980_vm3, %v460_v15, %v611_v34  ;;  %v797_v46 = vshrl.u32 %v3007_v43, 16  ;;  %v799_v47 = vshll.u32 %v3007_v43, 16  ;;  %v516_v48 = vrot.slane %v514_v31, 7  ;;  %v2794_v15 = vld [vmem:[%s3974_s1 + $0x70] sm:$0xff] }
  0x1a   : > { %v753_v49 = vrot.slane %v751_v41, 1  ;;  %v756_v50 = vshll.u32 %v3012_v45, 16  ;;  %v3019_v51 = vsel %vm2980_vm3, %v488_v21, %v627_v42  ;;  %v591_v52 = vpack.c.b16 %v2863_v23, %v2863_v23  ;;  %v2887_v23 = vld [vmem:[%s2967_s23 + $0x40] sm:$0xff]  }
  0x1b   : > { %v801_v53 = vrot.slane %v799_v47, 1  ;;  %v804_v54 = vshll.u32 %v3019_v51, 16  ;;  %v519_v55 = vor.u32 %v517_v37, %v516_v48  ;;  %v2822_v56 = vunpack.c.l.b16 %v2880_v44 }
  0x1c   : > { %1343 = vmatpush.bf16.msrb.mxu2 %v2791_v32  ;;  %1109 = vmatpush.bf16.msrb.mxu1 %v2783_v38  ;;  %v754_v58 = vor.u32 %v753_v49, %v749_v40  ;;  %v758_v59 = vrot.slane %v756_v50, 1  ;;  %v641_v60 = vshll.u32 %v591_v52, 16  ;;  %v2823_v61 = vunpack.c.h.b16 %v2880_v44 }
  0x1d   : > { %1491 = vmatpush.bf16.msrb.mxu3 %v2795_v33  ;;  %1650 = vmatpush.bf16.msrb.mxu0 %v2799_v39  ;;  %v802_v62 = vor.u32 %v801_v53, %v797_v46  ;;  %v806_v63 = vrot.slane %v804_v54, 1  ;;  %v3027_v0 = vsel %vm2980_vm3, %v358_v36, %v519_v55  ;;  %v308_v1 = vpack.c.b16 %v2822_v56, %v2822_v56  ;;  %v2891_v56 = vld [vmem:[%s2967_s23 + $0x60] sm:$0xff]  }
  0x1e   : > { %v3031_v3 = vsel %vm711_vm2, %v754_v58, %v758_v59  ;;  %v643_v4 = vrot.slane %v641_v60, 3  ;;  %v845_v5 = vshrl.u32 %v3027_v0, 16  ;;  %v847_v6 = vshll.u32 %v3027_v0, 16 }
  0x1f   : > { %4005 = vst [vmem:[#allocation3_spill] sm:$0xff] %v3031_v3  ;;  %2508 = vmatmul.msk.bf16.vlgmr.msra.gmra.mxu1 %vm916_vm4, %v3031_v3  ;;  %v3038_v7 = vsel %vm711_vm2, %v802_v62, %v806_v63  ;;  %v325_v8 = vshrl.u32 %v308_v1, 16  ;;  %v437_v9 = vshrl.u32 %v2880_v44, 16  ;;  %v440_v10 = vshll.u32 %v2880_v44, 16 }
  0x20   : > { %1344 = vmatpush.bf16.msrb.mxu2 %v2790_v57  ;;  %4006 = vst [vmem:[#allocation4_spill] sm:$0xff] %v3038_v7  ;;  %v3044_v11 = vsel %vm2980_vm3, %v516_v48, %v643_v4  ;;  %v849_v12 = vrot.slane %v847_v6, 1  ;;  %v580_v13 = vpack.c.b16 %v2823_v61, %v2823_v61  ;;  %v2834_v14 = vunpack.c.l.b16 %v2883_v2  ;;  %1110 = vmatpush.bf16.msrb.mxu1 %v2782_v16 }
  0x21   : > { %2512 = vmatmul.msk.bf16.vlgmr.msra.gmra.mxu2 %vm916_vm4, %v3038_v7  ;;  %v852_v18 = vshll.u32 %v3044_v11, 16  ;;  %v439_v20 = vrot.slane %v437_v9, 7  ;;  %v2835_v21 = vunpack.c.h.b16 %v2883_v2  ;;  %v465_v22 = vshrl.u32 %v2883_v2, 16  ;;  %1492 = vmatpush.bf16.msrb.mxu3 %v2794_v15 }
  0x22   : > { %v850_v24 = vor.u32 %v849_v12, %v845_v5  ;;  %v597_v25 = vshll.u32 %v580_v13, 16  ;;  %v312_v26 = vpack.c.b16 %v2834_v14, %v2834_v14  ;;  %v468_v27 = vshll.u32 %v2883_v2, 16  ;;  %1651 = vmatpush.bf16.msrb.mxu0 %v2798_v17  ;;  %v2817_v13 = vld [vmem:[%s2967_s23] sm:$0xff]  }
  0x23   : > { %v854_v28 = vrot.slane %v852_v18, 1  ;;  %v442_v29 = vor.u32 %v440_v10, %v439_v20  ;;  %v467_v30 = vrot.slane %v465_v22, 7  ;;  %v584_v31 = vpack.c.b16 %v2835_v21, %v2835_v21 }
  0x24   : > { %v599_v32 = vrot.slane %v597_v25, 3  ;;  %v337_v33 = vshrl.u32 %v312_v26, 16  ;;  %v2850_v34 = vunpack.c.l.b16 %v2887_v23  ;;  %v2851_v36 = vunpack.c.h.b16 %v2887_v23 }
  0x25   : > { %v3058_v37 = vsel %vm711_vm2, %v850_v24, %v854_v28  ;;  %v3062_v38 = vsel %vm2980_vm3, %v325_v8, %v442_v29  ;;  %v470_v39 = vor.u32 %v468_v27, %v467_v30  ;;  %v613_v40 = vshll.u32 %v584_v31, 16 }
  0x26   : > { %2516 = vmatmul.msk.bf16.vlgmr.msra.gmra.mxu3 %vm916_vm4, %v3058_v37  ;;  %v3068_v41 = vsel %vm2980_vm3, %v439_v20, %v599_v32  ;;  %v713_v42 = vshrl.u32 %v3062_v38, 16  ;;  %v715_v44 = vshll.u32 %v3062_v38, 16  ;;  %v316_v46 = vpack.c.b16 %v2850_v34, %v2850_v34  ;;  %v2793_v32 = vld [vmem:[%s3974_s1 + $0x68] sm:$0xff] }
  0x27   : > { %v720_v47 = vshll.u32 %v3068_v41, 16  ;;  %v615_v48 = vrot.slane %v613_v40, 3  ;;  %v3075_v49 = vsel %vm2980_vm3, %v337_v33, %v470_v39  ;;  %v493_v50 = vshrl.u32 %v2887_v23, 16  ;;  %v2781_v33 = vld [vmem:[%s3974_s1 + $0x8] sm:$0xff]  ;;  %1493 = vmatpush.bf16.msrb.mxu3 %v2793_v32 }
  0x28   : > { %4007 = vst [vmem:[#allocation5_spill] sm:$0xff] %v3075_v49  ;;  %v717_v52 = vrot.slane %v715_v44, 1  ;;  %v761_v53 = vshrl.u32 %v3075_v49, 16  ;;  %v763_v54 = vshll.u32 %v3075_v49, 16  ;;  %v349_v55 = vshrl.u32 %v316_v46, 16  ;;  %v2797_v34 = vld [vmem:[%s3974_s1 + $0x88] sm:$0xff]  ;;  %1111 = vmatpush.bf16.msrb.mxu1 %v2781_v33 }
  0x29   : > { %v722_v57 = vrot.slane %v720_v47, 1  ;;  %v3082_v58 = vsel %vm2980_vm3, %v467_v30, %v615_v48  ;;  %v495_v59 = vrot.slane %v493_v50, 7  ;;  %v496_v60 = vshll.u32 %v2887_v23, 16  ;;  %v2789_v23 = vld [vmem:[%s3974_s1 + $0x48] sm:$0xff]  ;;  %1652 = vmatpush.bf16.msrb.mxu0 %v2797_v34 }
  0x2a   : > { %v718_v61 = vor.u32 %v717_v52, %v713_v42  ;;  %v765_v62 = vrot.slane %v763_v54, 1  ;;  %v768_v63 = vshll.u32 %v3082_v58, 16  ;;  %v588_v1 = vpack.c.b16 %v2851_v36, %v2851_v36  ;;  %1345 = vmatpush.bf16.msrb.mxu2 %v2789_v23  ;;  %v2884_v44 = vld [vmem:[%s2967_s23 + $0x28] sm:$0xff]  }
  0x2b   : > { %v498_v2 = vor.u32 %v496_v60, %v495_v59  ;;  %v2866_v4 = vunpack.c.l.b16 %v2891_v56  ;;  %v2867_v5 = vunpack.c.h.b16 %v2891_v56  ;;  %v521_v6 = vshrl.u32 %v2891_v56, 16 }
  0x2c   : > { %v3086_v8 = vsel %vm711_vm2, %v718_v61, %v722_v57  ;;  %v766_v9 = vor.u32 %v765_v62, %v761_v53  ;;  %v770_v10 = vrot.slane %v768_v63, 1  ;;  %v629_v12 = vshll.u32 %v588_v1, 16 }
  0x2d   : > { %2504 = vmatmul.msk.bf16.vlgmr.msra.gmra.mxu0 %vm916_vm4, %v3086_v8  ;;  %v3093_v14 = vsel %vm2980_vm3, %v349_v55, %v498_v2  ;;  %v320_v15 = vpack.c.b16 %v2866_v4, %v2866_v4  ;;  %v523_v16 = vrot.slane %v521_v6, 7  ;;  %v524_v17 = vshll.u32 %v2891_v56, 16 }
  0x2e   : > { %v3096_v18 = vsel %vm711_vm2, %v766_v9, %v770_v10  ;;  %v631_v20 = vrot.slane %v629_v12, 3  ;;  %v809_v21 = vshrl.u32 %v3093_v14, 16  ;;  %v811_v22 = vshll.u32 %v3093_v14, 16  ;;  %v2888_v9 = vld [vmem:[%s2967_s23 + $0x48] sm:$0xff]  }
  0x2f   : > { %4008 = vst [vmem:[#allocation6_spill] sm:$0xff] %v3096_v18  ;;  %2509 = vmatmul.msk.bf16.gmra.mxu1 %vm916_vm4, %v3096_v18  ;;  %v361_v24 = vshrl.u32 %v320_v15, 16  ;;  %v526_v25 = vor.u32 %v524_v17, %v523_v16  ;;  %v592_v26 = vpack.c.b16 %v2867_v5, %v2867_v5  ;;  %v2818_v27 = vunpack.c.l.b16 %v2817_v13 }
  0x30   : > { %v3107_v28 = vsel %vm2980_vm3, %v495_v59, %v631_v20  ;;  %v813_v29 = vrot.slane %v811_v22, 1  ;;  %v2819_v30 = vunpack.c.h.b16 %v2817_v13  ;;  %v444_v31 = vshrl.u32 %v2817_v13, 16 }
  0x31   : > { %v816_v36 = vshll.u32 %v3107_v28, 16  ;;  %v645_v39 = vshll.u32 %v592_v26, 16  ;;  %v3121_v40 = vsel %vm2980_vm3, %v361_v24, %v526_v25  ;;  %v309_v42 = vpack.c.b16 %v2818_v27, %v2818_v27 }
  0x32   : > { %v814_v46 = vor.u32 %v813_v29, %v809_v21  ;;  %v857_v47 = vshrl.u32 %v3121_v40, 16  ;;  %v859_v48 = vshll.u32 %v3121_v40, 16  ;;  %v446_v50 = vrot.slane %v444_v31, 7 }
  0x33   : > { %v818_v52 = vrot.slane %v816_v36, 1  ;;  %v647_v53 = vrot.slane %v645_v39, 3  ;;  %v328_v54 = vshrl.u32 %v309_v42, 16  ;;  %v447_v55 = vshll.u32 %v2817_v13, 16 }
  0x34   : > { %v861_v56 = vrot.slane %v859_v48, 1  ;;  %v581_v57 = vpack.c.b16 %v2819_v30, %v2819_v30  ;;  %v2838_v59 = vunpack.c.l.b16 %v2884_v44  ;;  %v2839_v60 = vunpack.c.h.b16 %v2884_v44 }
  0x35   : > { %v3127_v61 = vsel %vm711_vm2, %v814_v46, %v818_v52  ;;  %v3131_v62 = vsel %vm2980_vm3, %v523_v16, %v647_v53  ;;  %v449_v63 = vor.u32 %v447_v55, %v446_v50  ;;  %v472_v1 = vshrl.u32 %v2884_v44, 16  ;;  %v2892_v46 = vld [vmem:[%s2967_s23 + $0x68] sm:$0xff]  }
  0x36   : > { %4009 = vst [vmem:[#allocation7_spill] sm:$0xff] %v3127_v61  ;;  %2513 = vmatmul.msk.bf16.gmra.mxu2 %vm916_vm4, %v3127_v61  ;;  %v862_v2 = vor.u32 %v861_v56, %v857_v47  ;;  %v864_v4 = vshll.u32 %v3131_v62, 16  ;;  %v601_v5 = vshll.u32 %v581_v57, 16  ;;  %v313_v6 = vpack.c.b16 %v2838_v59, %v2838_v59  ;;  %v2788_v57 = vld [vmem:[%s3974_s1 + $0x40] sm:$0xff] }
  0x37   : > { %v3139_v10 = vsel %vm2980_vm3, %v328_v54, %v449_v63  ;;  %v474_v12 = vrot.slane %v472_v1, 7  ;;  %v475_v13 = vshll.u32 %v2884_v44, 16  ;;  %v585_v15 = vpack.c.b16 %v2839_v60, %v2839_v60  ;;  %1346 = vmatpush.bf16.msrb.mxu2 %v2788_v57 }
  0x38   : > { %v866_v16 = vrot.slane %v864_v4, 1  ;;  %v603_v17 = vrot.slane %v601_v5, 3  ;;  %v725_v20 = vshrl.u32 %v3139_v10, 16  ;;  %v727_v21 = vshll.u32 %v3139_v10, 16 }
  0x39   : > { %v340_v22 = vshrl.u32 %v313_v6, 16  ;;  %v477_v23 = vor.u32 %v475_v13, %v474_v12  ;;  %v617_v24 = vshll.u32 %v585_v15, 16  ;;  %v2854_v25 = vunpack.c.l.b16 %v2888_v9 }
  0x3a   : > { %v3144_v26 = vsel %vm711_vm2, %v862_v2, %v866_v16  ;;  %v3148_v27 = vsel %vm2980_vm3, %v446_v50, %v603_v17  ;;  %v729_v29 = vrot.slane %v727_v21, 1  ;;  %v2855_v30 = vunpack.c.h.b16 %v2888_v9  ;;  %v2885_v2 = vld [vmem:[%s2967_s23 + $0x30] sm:$0xff]  }
  0x3b   : > { %2517 = vmatmul.msk.bf16.gmra.mxu3 %vm916_vm4, %v3144_v26  ;;  %v732_v31 = vshll.u32 %v3148_v27, 16  ;;  %v619_v32 = vrot.slane %v617_v24, 3  ;;  %v3155_v33 = vsel %vm2980_vm3, %v340_v22, %v477_v23  ;;  %v317_v34 = vpack.c.b16 %v2854_v25, %v2854_v25  ;;  %v2792_v23 = vld [vmem:[%s3974_s1 + $0x60] sm:$0xff] }
  0x3c   : > { %4010 = vst [vmem:[#allocation8_spill] sm:$0xff] %v3155_v33  ;;  %v730_v36 = vor.u32 %v729_v29, %v725_v20  ;;  %v773_v39 = vshrl.u32 %v3155_v33, 16  ;;  %v775_v42 = vshll.u32 %v3155_v33, 16  ;;  %v500_v44 = vshrl.u32 %v2888_v9, 16  ;;  %v2780_v24 = vld [vmem:[%s3974_s1] sm:$0xff]  ;;  %1494 = vmatpush.bf16.msrb.mxu3 %v2792_v23 }
  0x3d   : > { %v734_v47 = vrot.slane %v732_v31, 1  ;;  %v3162_v48 = vsel %vm2980_vm3, %v474_v12, %v619_v32  ;;  %v352_v50 = vshrl.u32 %v317_v34, 16  ;;  %v503_v52 = vshll.u32 %v2888_v9, 16  ;;  %v2796_v25 = vld [vmem:[%s3974_s1 + $0x80] sm:$0xff]  ;;  %1112 = vmatpush.bf16.msrb.mxu1 %v2780_v24 }
  0x3e   : > { %v777_v53 = vrot.slane %v775_v42, 1  ;;  %v780_v54 = vshll.u32 %v3162_v48, 16  ;;  %v502_v55 = vrot.slane %v500_v44, 7  ;;  %v589_v56 = vpack.c.b16 %v2855_v30, %v2855_v30  ;;  %1653 = vmatpush.bf16.msrb.mxu0 %v2796_v25  ;;  %v2893_v25 = vld [vmem:[%s2967_s23 + $0x70] sm:$0xff]  }
  0x3f   : > { %v3169_v59 = vsel %vm711_vm2, %v730_v36, %v734_v47  ;;  %v2870_v60 = vunpack.c.l.b16 %v2892_v46  ;;  %v2871_v63 = vunpack.c.h.b16 %v2892_v46  ;;  %v528_v1 = vshrl.u32 %v2892_v46, 16 }
  0x40   : > { %2505 = vmatmul.msk.bf16.gmra.mxu0 %vm916_vm4, %v3169_v59  ;;  %v778_v4 = vor.u32 %v777_v53, %v773_v39  ;;  %v782_v5 = vrot.slane %v780_v54, 1  ;;  %v505_v6 = vor.u32 %v503_v52, %v502_v55  ;;  %v633_v9 = vshll.u32 %v589_v56, 16  ;;  %v2889_v52 = vld [vmem:[%s2967_s23 + $0x50] sm:$0xff]  }
  0x41   : > { %v321_v12 = vpack.c.b16 %v2870_v60, %v2870_v60  ;;  %v530_v13 = vrot.slane %v528_v1, 7  ;;  %v531_v15 = vshll.u32 %v2892_v46, 16  ;;  %v593_v16 = vpack.c.b16 %v2871_v63, %v2871_v63 }
  0x42   : > { %v3175_v17 = vsel %vm711_vm2, %v778_v4, %v782_v5  ;;  %v635_v20 = vrot.slane %v633_v9, 3  ;;  %v3179_v21 = vsel %vm2980_vm3, %v352_v50, %v505_v6  ;;  %v2842_v22 = vunpack.c.l.b16 %v2885_v2 }
  0x43   : > { %4011 = vst [vmem:[#allocation9_spill] sm:$0xff] %v3175_v17  ;;  %2510 = vmatmul.msk.bf16.gmra.mxu1 %vm916_vm4, %v3175_v17  ;;  %v821_v29 = vshrl.u32 %v3179_v21, 16  ;;  %v823_v30 = vshll.u32 %v3179_v21, 16  ;;  %v364_v31 = vshrl.u32 %v321_v12, 16  ;;  %v533_v32 = vor.u32 %v531_v15, %v530_v13 }
  0x44   : > { %v3196_v34 = vsel %vm2980_vm3, %v502_v55, %v635_v20  ;;  %v649_v36 = vshll.u32 %v593_v16, 16  ;;  %v2843_v39 = vunpack.c.h.b16 %v2885_v2  ;;  %v314_v42 = vpack.c.b16 %v2842_v22, %v2842_v22 }
  0x45   : > { %v825_v44 = vrot.slane %v823_v30, 1  ;;  %v828_v46 = vshll.u32 %v3196_v34, 16  ;;  %v3201_v47 = vsel %vm2980_vm3, %v364_v31, %v533_v32  ;;  %v479_v50 = vshrl.u32 %v2885_v2, 16 }
  0x46   : > { %v651_v53 = vrot.slane %v649_v36, 3  ;;  %v869_v54 = vshrl.u32 %v3201_v47, 16  ;;  %v871_v55 = vshll.u32 %v3201_v47, 16  ;;  %v343_v56 = vshrl.u32 %v314_v42, 16 }
  0x47   : > { %v826_v57 = vor.u32 %v825_v44, %v821_v29  ;;  %v830_v60 = vrot.slane %v828_v46, 1  ;;  %v481_v63 = vrot.slane %v479_v50, 7  ;;  %v482_v1 = vshll.u32 %v2885_v2, 16 }
  0x48   : > { %v3208_v4 = vsel %vm2980_vm3, %v530_v13, %v651_v53  ;;  %v873_v5 = vrot.slane %v871_v55, 1  ;;  %v586_v6 = vpack.c.b16 %v2843_v39, %v2843_v39  ;;  %v2858_v9 = vunpack.c.l.b16 %v2889_v52 }
  0x49   : > { %v3211_v12 = vsel %vm711_vm2, %v826_v57, %v830_v60  ;;  %v876_v15 = vshll.u32 %v3208_v4, 16  ;;  %v484_v16 = vor.u32 %v482_v1, %v481_v63  ;;  %v2859_v20 = vunpack.c.h.b16 %v2889_v52  ;;  %v2807_v57 = vld [vmem:[%s3974_s1 + $0xd8] sm:$0xff] }
  0x4a   : > { %2514 = vmatmul.msk.bf16.gmra.mxu2 %vm916_vm4, %v3211_v12  ;;  %v874_v22 = vor.u32 %v873_v5, %v869_v54  ;;  %v621_v23 = vshll.u32 %v586_v6, 16  ;;  %v318_v2 = vpack.c.b16 %v2858_v9, %v2858_v9  ;;  %v507_v24 = vshrl.u32 %v2889_v52, 16 }
  0x4b   : > { %v878_v13 = vrot.slane %v876_v15, 1  ;;  %v3219_v29 = vsel %vm2980_vm3, %v343_v56, %v484_v16  ;;  %v510_v30 = vshll.u32 %v2889_v52, 16  ;;  %v590_v31 = vpack.c.b16 %v2859_v20, %v2859_v20  ;;  %v2881_v20 = vld [vmem:[%s2967_s23 + $0x10] sm:$0xff]   ;;  %1948 = vmatpush.bf16.msra.mxu2 %v2807_v57 }
  0x4c   : > { %4012 = vst [vmem:[#allocation10_spill] sm:$0xff] %v3219_v29  ;;  %v623_v32 = vrot.slane %v621_v23, 3  ;;  %v785_v36 = vshrl.u32 %v3219_v29, 16  ;;  %v787_v39 = vshll.u32 %v3219_v29, 16  ;;  %v355_v42 = vshrl.u32 %v318_v2, 16 }
  0x4d   : > { %v3224_v44 = vsel %vm711_vm2, %v874_v22, %v878_v13  ;;  %v509_v46 = vrot.slane %v507_v24, 7  ;;  %v637_v50 = vshll.u32 %v590_v31, 16  ;;  %v2874_v53 = vunpack.c.l.b16 %v2893_v25 }
  0x4e   : > { %4013 = vst [vmem:[#allocation11_spill] sm:$0xff] %v3224_v44  ;;  %2518 = vmatmul.msk.bf16.gmra.mxu3 %vm916_vm4, %v3224_v44  ;;  %v3230_v52 = vsel %vm2980_vm3, %v481_v63, %v623_v32  ;;  %v789_v54 = vrot.slane %v787_v39, 1  ;;  %v2875_v55 = vunpack.c.h.b16 %v2893_v25  ;;  %v535_v56 = vshrl.u32 %v2893_v25, 16  ;;  %v2811_v32 = vld [vmem:[%s3974_s1 + $0xf8] sm:$0xff] }
  0x4f   : > { %v792_v60 = vshll.u32 %v3230_v52, 16  ;;  %v512_v1 = vor.u32 %v510_v30, %v509_v46  ;;  %v639_v5 = vrot.slane %v637_v50, 3  ;;  %v322_v6 = vpack.c.b16 %v2874_v53, %v2874_v53  ;;  %v2815_v39 = vld [vmem:[%s3974_s1 + $0x118] sm:$0xff]  ;;  %2093 = vmatpush.bf16.msra.mxu3 %v2811_v32 }
  0x50   : > { %2506 = vmatmul.msk.bf16.gmra.mxu0 %vm916_vm4, %v3086_v8  ;;  %v790_v9 = vor.u32 %v789_v54, %v785_v36  ;;  %v537_v15 = vrot.slane %v535_v56, 7  ;;  %v538_v16 = vshll.u32 %v2893_v25, 16  ;;  %v594_v63 = vpack.c.b16 %v2875_v55, %v2875_v55  ;;  %v2803_v36 = vld [vmem:[%s3974_s1 + $0xb8] sm:$0xff] }
  0x51   : > { %v794_v22 = vrot.slane %v792_v60, 1  ;;  %v3241_v23 = vsel %vm2980_vm3, %v355_v42, %v512_v1  ;;  %v3245_v2 = vsel %vm2980_vm3, %v509_v46, %v639_v5  ;;  %v367_v24 = vshrl.u32 %v322_v6, 16  ;;  %1803 = vmatpush.bf16.msra.mxu1 %v2803_v36  ;;  %2238 = vmatpush.bf16.msra.mxu0 %v2815_v39 }
  0x52   : > { %v833_v13 = vshrl.u32 %v3241_v23, 16  ;;  %v835_v30 = vshll.u32 %v3241_v23, 16  ;;  %v840_v31 = vshll.u32 %v3245_v2, 16  ;;  %v540_v25 = vor.u32 %v538_v16, %v537_v15 }
  0x53   : > { %v3260_v42 = vsel %vm711_vm2, %v790_v9, %v794_v22  ;;  %v653_v46 = vshll.u32 %v594_v63, 16  ;;  %v2826_v50 = vunpack.c.l.b16 %v2881_v20  ;;  %v2827_v53 = vunpack.c.h.b16 %v2881_v20 }
  0x54   : > { %4014 = vst [vmem:[#allocation12_spill] sm:$0xff] %v3260_v42  ;;  %2511 = vmatmul.msk.bf16.gmra.mxu1 %vm916_vm4, %v3260_v42  ;;  %v837_v54 = vrot.slane %v835_v30, 1  ;;  %v842_v55 = vrot.slane %v840_v31, 1  ;;  %v3266_v56 = vsel %vm2980_vm3, %v367_v24, %v540_v25  ;;  %v451_v57 = vshrl.u32 %v2881_v20, 16 }
  0x55   : > { %4015 = vst [vmem:[#allocation13_spill] sm:$0xff] %v3266_v56  ;;  %v655_v60 = vrot.slane %v653_v46, 3  ;;  %v881_v1 = vshrl.u32 %v3266_v56, 16  ;;  %v883_v5 = vshll.u32 %v3266_v56, 16  ;;  %v310_v6 = vpack.c.b16 %v2826_v50, %v2826_v50 }
  0x56   : > { %v838_v9 = vor.u32 %v837_v54, %v833_v13  ;;  %v453_v16 = vrot.slane %v451_v57, 7  ;;  %v454_v63 = vshll.u32 %v2881_v20, 16  ;;  %v582_v22 = vpack.c.b16 %v2827_v53, %v2827_v53 }
  0x57   : > { %v3272_v30 = vsel %vm2980_vm3, %v537_v15, %v655_v60  ;;  %v885_v24 = vrot.slane %v883_v5, 1  ;;  %v331_v31 = vshrl.u32 %v310_v6, 16  ;;  %v1225_v5 = vrot.slane %v3062_v38, 1 }
  0x58   : > { %v3275_v25 = vsel %vm711_vm2, %v838_v9, %v842_v55  ;;  %v888_v32 = vshll.u32 %v3272_v30, 16  ;;  %v456_v46 = vor.u32 %v454_v63, %v453_v16  ;;  %v605_v56 = vshll.u32 %v582_v22, 16  ;;  %v2814_v22 = vld [vmem:[%s3974_s1 + $0x110] sm:$0xff] }
  0x59   : > { %v886_v50 = vor.u32 %v885_v24, %v881_v1  ;;  %v1226_v6 = vrot.slane %v3068_v41, 1  ;;  %v1229_v41 = vrot.slane %v3148_v27, 1  ;;  %v2810_v27 = vld [vmem:[%s3974_s1 + $0xf0] sm:$0xff]  ;;  %2239 = vmatpush.bf16.msra.mxu0 %v2814_v22 }
  0x5a   : > { %2515 = vmatmul.msk.bf16.gmra.mxu2 %vm916_vm4, %v3275_v25  ;;  %v890_v13 = vrot.slane %v888_v32, 1  ;;  %v607_v20 = vrot.slane %v605_v56, 3  ;;  %v3282_v36 = vsel %vm2980_vm3, %v331_v31, %v456_v46  ;;  %2094 = vmatpush.bf16.msra.mxu3 %v2810_v27 }
  0x5b   : > { %v737_v15 = vshrl.u32 %v3282_v36, 16  ;;  %v739_v39 = vshll.u32 %v3282_v36, 16  ;;  %v3303_v9 = vsel %vm1224_vm5, %v1225_v5, %v1226_v6  ;;  %v1231_v24 = vrot.slane %v3282_v36, 1 }
  0x5c   : > { %v3287_v53 = vsel %vm711_vm2, %v886_v50, %v890_v13  ;;  %v697_v54 = vsel %vm2980_vm3, %v453_v16, %v607_v20  ;;  %v1228_v16 = vrot.slane %v3139_v10, 1  ;;  %v1234_v50 = vrot.slane %v2994_v35, 1 }
  0x5d   : > { %v741_v55 = vrot.slane %v739_v39, 1  ;;  %v744_v57 = vshll.u32 %v697_v54, 16  ;;  %v1232_v31 = vrot.slane %v697_v54, 1  ;;  %v1235_v13 = vrot.slane %v3012_v45, 1 }
  0x5e   : > { %2519 = vmatmul.msk.bf16.gmra.mxu3 %vm916_vm4, %v3287_v53  ;;  %v3316_v63 = vsel %vm1224_vm5, %v1228_v16, %v1229_v41  ;;  %v1238_v5 = vrot.slane %v3082_v58, 1 }
  0x5f   : > { %v742_v56 = vor.u32 %v741_v55, %v737_v15  ;;  %v746_v60 = vrot.slane %v744_v57, 1  ;;  %v3348_v32 = vsel %vm1224_vm5, %v1231_v24, %v1232_v31  ;;  %v3367_v39 = vsel %vm1224_vm5, %v1234_v50, %v1235_v13 }
  0x60   : > { %4016 = vst [vmem:[#allocation14_spill] sm:$0xff] %v3367_v39  ;;  %v1240_v24 = vrot.slane %v3155_v33, 1  ;;  %v1241_v31 = vrot.slane %v3162_v48, 1  ;;  %v2805_v48 = vld [vmem:[%s3974_s1 + $0xc8] sm:$0xff] }
  0x61   : > { %v3294_v1 = vsel %vm711_vm2, %v742_v56, %v746_v60  ;;  %v1237_v60 = vrot.slane %v3075_v49, 1 }
  0x62   : > { %2507 = vmatmul.msk.bf16.gmra.mxu0 %vm916_vm4, %v3294_v1 }
  0x63   : > { %v3390_v41 = vsel %vm1224_vm5, %v1237_v60, %v1238_v5  ;;  %v3415_v60 = vsel %vm1224_vm5, %v1240_v24, %v1241_v31  ;;  %v2809_v31 = vld [vmem:[%s3974_s1 + $0xe8] sm:$0xff] }
  0x64   : > { %2536 = vmatmul.msk.bf16.vlgmr.msrb.gmra.mxu1 %vm916_vm4, %v3062_v38  ;;  %4019 = vst [vmem:[#allocation17_spill] sm:$0xff] %v3390_v41  ;;  %2095 = vmatpush.bf16.msra.mxu3 %v2809_v31 }
  0x65   : > { %4022 = vst [vmem:[#allocation20_spill] sm:$0xff] %v3415_v60 }
  0x6a   : > { %2568 = vmatmul.msk.bf16.vlgmr.msrb.gmra.mxu2 %vm916_vm4, %v3303_v9 }
  0x6e   : > { %2600 = vmatmul.msk.bf16.vlgmr.msrb.gmra.mxu3 %vm916_vm4, %v3139_v10 }
  0x72   : > { %2632 = vmatmul.msk.bf16.vlgmr.msrb.gmra.mxu0 %vm916_vm4, %v3169_v59  ;;  %v2802_v59 = vld [vmem:[%s3974_s1 + $0xb0] sm:$0xff] }
  0x73   : > { %1804 = vmatpush.bf16.msra.mxu1 %v2802_v59 }
  0x74   : > { %2537 = vmatmul.msk.bf16.gmra.mxu1 %vm916_vm4, %v3139_v10  ;;  %v2806_v10 = vld [vmem:[%s3974_s1 + $0xd0] sm:$0xff] }
  0x75   : > { %1949 = vmatpush.bf16.msra.mxu2 %v2806_v10 }
  0x79   : > { %1950 = vmatpush.bf16.msra.mxu2 %v2805_v48 }
  0x7a   : > { %2569 = vmatmul.msk.bf16.gmra.mxu2 %vm916_vm4, %v3316_v63 }
  0x7e   : > { %2601 = vmatmul.msk.bf16.gmra.mxu3 %vm916_vm4, %v3062_v38 }
  0x82   : > { %2633 = vmatmul.msk.bf16.gmra.mxu0 %vm916_vm4, %v3086_v8 }
  0x84   : > { %2538 = vmatmul.msk.bf16.gmra.mxu1 %vm916_vm4, %v3062_v38 }
  0x8a   : > { %2570 = vmatmul.msk.bf16.gmra.mxu2 %vm916_vm4, %v3303_v9 }
  0x8e   : > { %2602 = vmatmul.msk.bf16.gmra.mxu3 %vm916_vm4, %v3282_v36 }
  0x92   : > { %2634 = vmatmul.msk.bf16.gmra.mxu0 %vm916_vm4, %v3294_v1 }
  0x94   : > { %2539 = vmatmul.msk.bf16.gmra.mxu1 %vm916_vm4, %v3282_v36 }
  0x9a   : > { %2571 = vmatmul.msk.bf16.gmra.mxu2 %vm916_vm4, %v3348_v32 }
  0x9c   : > { %v3352_v46 = vpop.f32.mrf.mxu1 }
  0x9e   : > { %2603 = vmatmul.msk.bf16.gmra.mxu3 %vm916_vm4, %v2994_v35 }
  0xa2   : > { %2635 = vmatmul.msk.bf16.gmra.mxu0 %vm916_vm4, %v3031_v3 }
  0xa4   : > { %2540 = vmatmul.msk.bf16.gmra.mxu1 %vm916_vm4, %v2994_v35  ;;  %v3362_v20 = vpop.f32.mrf.mxu1  ;;  %v3364_v15 = vpop.f32.mrf.mxu2 }
  0xa9   : > { %v3371_v55 = vpop.f32.mrf.mxu3 }
  0xaa   : > { %v971_v54 = vpop.f32.mrf.mxu0  ;;  %2572 = vmatmul.msk.bf16.gmra.mxu2 %vm916_vm4, %v3367_v39  ;;  %4017 = vst [vmem:[#allocation15_spill] sm:$0xff] %v3371_v55  ;;  %v1244_v55 = vrot.slane %v3230_v52, 1 }
  0xac   : > { %v3373_v57 = vpop.f32.mrf.mxu1  ;;  %v3377_v45 = vpop.f32.mrf.mxu2 }
  0xae   : > { %2604 = vmatmul.msk.bf16.gmra.mxu3 %vm916_vm4, %v3075_v49 }
  0xb1   : > { %v3383_v6 = vpop.f32.mrf.mxu3 }
  0xb2   : > { %2636 = vmatmul.msk.bf16.gmra.mxu0 %vm916_vm4, %v3096_v18  ;;  %v973_v56 = vpop.f32.mrf.mxu0  ;;  %4018 = vst [vmem:[#allocation16_spill] sm:$0xff] %v3383_v6 }
  0xb4   : > { %2541 = vmatmul.msk.bf16.gmra.mxu1 %vm916_vm4, %v3075_v49  ;;  %v3387_v16 = vpop.f32.mrf.mxu1 }
  0xb9   : > { %v3392_v10 = vpop.f32.mrf.mxu2 }
  0xba   : > { %2573 = vmatmul.msk.bf16.gmra.mxu2 %vm916_vm4, %v3390_v41 }
  0xbd   : > { %v976_v27 = vpop.f32.mrf.mxu0 }
  0xbe   : > { %2605 = vmatmul.msk.bf16.gmra.mxu3 %vm916_vm4, %v3155_v33  ;;  %v3398_v58 = vpop.f32.mrf.mxu3 }
  0xbf   : > { %4020 = vst [vmem:[#allocation18_spill] sm:$0xff] %v3398_v58 }
  0xc0   : > { %v3400_v59 = vpop.f32.mrf.mxu1 }
  0xc1   : > { %v3404_v22 = vpop.f32.mrf.mxu2 }
  0xc2   : > { %2637 = vmatmul.msk.bf16.gmra.mxu0 %vm916_vm4, %v3175_v17  ;;  %v1243_v17 = vrot.slane %v3219_v29, 1 }
  0xc4   : > { %2542 = vmatmul.msk.bf16.gmra.mxu1 %vm916_vm4, %v3155_v33  ;;  %v2813_v33 = vld [vmem:[%s3974_s1 + $0x108] sm:$0xff] }
  0xc5   : > { %v3410_v50 = vpop.f32.mrf.mxu0  ;;  %2240 = vmatpush.bf16.msra.mxu0 %v2813_v33  ;;  %v1247_v33 = vrot.slane %v3019_v51, 1 }
  0xc6   : > { %v3412_v13 = vpop.f32.mrf.mxu3 }
  0xc7   : > { %4021 = vst [vmem:[#allocation19_spill] sm:$0xff] %v3412_v13 }
  0xc8   : > { %v3417_v5 = vpop.f32.mrf.mxu1 }
  0xca   : > { %2574 = vmatmul.msk.bf16.gmra.mxu2 %vm916_vm4, %v3415_v60  ;;  %v2801_v60 = vld [vmem:[%s3974_s1 + $0xa8] sm:$0xff] }
  0xcb   : > { %1805 = vmatpush.bf16.msra.mxu1 %v2801_v60 }
  0xcd   : > { %v3421_v58 = vpop.f32.mrf.mxu0  ;;  %v3423_v6 = vpop.f32.mrf.mxu2 }
  0xce   : > { %2606 = vmatmul.msk.bf16.gmra.mxu3 %vm916_vm4, %v3219_v29 }
  0xd1   : > { %v3430_v13 = vpop.f32.mrf.mxu3  ;;  %v3432_v24 = vpop.f32.mrf.mxu1 }
  0xd2   : > { %4023 = vst [vmem:[#allocation21_spill] sm:$0xff] %v3430_v13  ;;  %2638 = vmatmul.msk.bf16.gmra.mxu0 %vm916_vm4, %v3260_v42  ;;  %v3451_v42 = vsel %vm1224_vm5, %v1243_v17, %v1244_v55 }
  0xd3   : > { %4025 = vst [vmem:[#allocation23_spill] sm:$0xff] %v3451_v42 }
  0xd4   : > { %2543 = vmatmul.msk.bf16.gmra.mxu1 %vm916_vm4, %v3219_v29 }
  0xd5   : > { %v3446_v48 = vpop.f32.mrf.mxu0  ;;  %v3448_v13 = vpop.f32.mrf.mxu2 }
  0xd6   : > { %4024 = vst [vmem:[#allocation22_spill] sm:$0xff] %v3448_v13  ;;  %v1250_v13 = vrot.slane %v3107_v28, 1 }
  0xd9   : > { %v3456_v41 = vpop.f32.mrf.mxu3  ;;  %v3458_v18 = vpop.f32.mrf.mxu1 }
  0xda   : > { %4026 = vst [vmem:[#allocation24_spill] sm:$0xff] %v3456_v41  ;;  %2575 = vmatmul.msk.bf16.gmra.mxu2 %vm916_vm4, %v3451_v42  ;;  %v1246_v41 = vrot.slane %v3007_v43, 1 }
  0xdd   : > { %v3462_v52 = vpop.f32.mrf.mxu2 }
  0xde   : > { %4027 = vst [vmem:[#allocation25_spill] sm:$0xff] %v3462_v52  ;;  %2607 = vmatmul.msk.bf16.gmra.mxu3 %vm916_vm4, %v3007_v43  ;;  %v3481_v52 = vsel %vm1224_vm5, %v1246_v41, %v1247_v33 }
  0xdf   : > { %v3466_v60 = vpop.f32.mrf.mxu0  ;;  %4030 = vst [vmem:[#allocation28_spill] sm:$0xff] %v3481_v52 }
  0xe1   : > { %v3468_v17 = vpop.f32.mrf.mxu3  ;;  %v1114_v55 = vpop.f32.mrf.mxu1 }
  0xe2   : > { %4028 = vst [vmem:[#allocation26_spill] sm:$0xff] %v3468_v17  ;;  %2639 = vmatmul.msk.bf16.gmra.mxu0 %vm916_vm4, %v3038_v7  ;;  %v1115_v31 = vadd.f32 %v1114_v55, %v971_v54 }
  0xe4   : > { %2544 = vmatmul.msk.bf16.gmra.mxu1 %vm916_vm4, %v3007_v43 }
  0xe5   : > { %v3476_v42 = vpop.f32.mrf.mxu2 }
  0xe6   : > { %4029 = vst [vmem:[#allocation27_spill] sm:$0xff] %v3476_v42 }
  0xe7   : > { %v3478_v29 = vpop.f32.mrf.mxu0 }
  0xe9   : > { %v3483_v17 = vpop.f32.mrf.mxu3  ;;  %v1116_v49 = vpop.f32.mrf.mxu1 }
  0xea   : > { %4031 = vst [vmem:[#allocation29_spill] sm:$0xff] %v3483_v17  ;;  %2576 = vmatmul.msk.bf16.gmra.mxu2 %vm916_vm4, %v3481_v52  ;;  %v1117_v54 = vadd.f32 %v1116_v49, %v973_v56  ;;  %v1249_v17 = vrot.slane %v3093_v14, 1 }
  0xed   : > { %v1348_v55 = vpop.f32.mrf.mxu2 }
  0xee   : > { %2608 = vmatmul.msk.bf16.gmra.mxu3 %vm916_vm4, %v3093_v14  ;;  %v1428_v51 = vadd.f32 %v1348_v55, %v1115_v31  ;;  %v3498_v55 = vsel %vm1224_vm5, %v1249_v17, %v1250_v13 }
  0xef   : > { %v1655_v7 = vpop.f32.mrf.mxu0 }
  0xf1   : > { %v1496_v43 = vpop.f32.mrf.mxu3  ;;  %v1119_v42 = vpop.f32.mrf.mxu1 }
  0xf2   : > { %2640 = vmatmul.msk.bf16.gmra.mxu0 %vm916_vm4, %v3127_v61  ;;  %v1576_v41 = vadd.f32 %v1496_v43, %v1428_v51  ;;  %v1120_v33 = vadd.f32 %v1119_v42, %v976_v27 }
  0xf4   : > { %2545 = vmatmul.msk.bf16.gmra.mxu1 %vm916_vm4, %v3093_v14  ;;  %v3495_v49 = vadd.f32 %v1655_v7, %v1576_v41 }
  0xf5   : > { %v1350_v56 = vpop.f32.mrf.mxu2 }
  0xf6   : > { %v1429_v52 = vadd.f32 %v1350_v56, %v1117_v54 }
  0xf7   : > { %v1657_v31 = vpop.f32.mrf.mxu0 }
  0xf9   : > { %v1498_v39 = vpop.f32.mrf.mxu3  ;;  %v1121_v3 = vpop.f32.mrf.mxu1 }
  0xfa   : > { %v1577_v61 = vadd.f32 %v1498_v39, %v1429_v52  ;;  %2577 = vmatmul.msk.bf16.gmra.mxu2 %vm916_vm4, %v3498_v55  ;;  %v1122_v43 = vadd.f32 %v1121_v3, %v3410_v50  ;;  %v1252_v52 = vrot.slane %v3179_v21, 1  ;;  %v1253_v3 = vrot.slane %v3196_v34, 1 }
  0xfc   : > { %v3503_v28 = vadd.f32 %v1657_v31, %v1577_v61 }
  0xfd   : > { %v1353_v42 = vpop.f32.mrf.mxu2 }
  0xfe   : > { %2609 = vmatmul.msk.bf16.gmra.mxu3 %vm916_vm4, %v3179_v21  ;;  %v1430_v7 = vadd.f32 %v1353_v42, %v1120_v33  ;;  %v3517_v33 = vsel %vm1224_vm5, %v1252_v52, %v1253_v3  ;;  %v2808_v3 = vld [vmem:[%s3974_s1 + $0xe0] sm:$0xff] }
  0xff   : > { %v1660_v27 = vpop.f32.mrf.mxu0  ;;  %2096 = vmatpush.bf16.msra.mxu3 %v2808_v3 }
 0x101   : > { %v1501_v54 = vpop.f32.mrf.mxu3  ;;  %v1124_v51 = vpop.f32.mrf.mxu1 }
 0x102   : > { %2641 = vmatmul.msk.bf16.gmra.mxu0 %vm916_vm4, %v3211_v12  ;;  %v1578_v13 = vadd.f32 %v1501_v54, %v1430_v7  ;;  %v1125_v39 = vadd.f32 %v1124_v51, %v3421_v58  ;;  %v2804_v54 = vld [vmem:[%s3974_s1 + $0xc0] sm:$0xff] }
 0x103   : > { %1951 = vmatpush.bf16.msra.mxu2 %v2804_v54 }
 0x104   : > { %2546 = vmatmul.msk.bf16.gmra.mxu1 %vm916_vm4, %v3179_v21  ;;  %v3514_v61 = vadd.f32 %v1660_v27, %v1578_v13 }
 0x105   : > { %v1355_v50 = vpop.f32.mrf.mxu2 }
 0x106   : > { %v1431_v17 = vadd.f32 %v1355_v50, %v1122_v43  ;;  %v1255_v50 = vrot.slane %v3241_v23, 1 }
 0x107   : > { %v1662_v41 = vpop.f32.mrf.mxu0 }
 0x109   : > { %v1503_v56 = vpop.f32.mrf.mxu3  ;;  %v1126_v31 = vpop.f32.mrf.mxu1 }
 0x10a   : > { %v1579_v42 = vadd.f32 %v1503_v56, %v1431_v17  ;;  %2578 = vmatmul.msk.bf16.gmra.mxu2 %vm916_vm4, %v3517_v33  ;;  %v1127_v58 = vadd.f32 %v1126_v31, %v3446_v48  ;;  %v1256_v17 = vrot.slane %v3245_v2, 1 }
 0x10c   : > { %v3522_v34 = vadd.f32 %v1662_v41, %v1579_v42  ;;  %v3545_v42 = vsel %vm1224_vm5, %v1255_v50, %v1256_v17  ;;  %v1258_v17 = vrot.slane %v3027_v0, 1 }
 0x10d   : > { %v1358_v7 = vpop.f32.mrf.mxu2 }
 0x10e   : > { %2610 = vmatmul.msk.bf16.gmra.mxu3 %vm916_vm4, %v3241_v23  ;;  %v1432_v27 = vadd.f32 %v1358_v7, %v1125_v39  ;;  %v2800_v39 = vld [vmem:[%s3974_s1 + $0xa0] sm:$0xff] }
 0x10f   : > { %v1665_v43 = vpop.f32.mrf.mxu0  ;;  %1806 = vmatpush.bf16.msra.mxu1 %v2800_v39  ;;  %v2812_v7 = vld [vmem:[%s3974_s1 + $0x100] sm:$0xff] }
 0x110   : > { %2241 = vmatpush.bf16.msra.mxu0 %v2812_v7 }
 0x111   : > { %v1506_v51 = vpop.f32.mrf.mxu3  ;;  %v1129_v13 = vpop.f32.mrf.mxu1 }
 0x112   : > { %2642 = vmatmul.msk.bf16.gmra.mxu0 %vm916_vm4, %v3275_v25  ;;  %v1580_v52 = vadd.f32 %v1506_v51, %v1432_v27  ;;  %v1130_v48 = vadd.f32 %v1129_v13, %v3466_v60 }
 0x114   : > { %2547 = vmatmul.msk.bf16.gmra.mxu1 %vm916_vm4, %v3241_v23  ;;  %v3542_v41 = vadd.f32 %v1665_v43, %v1580_v52 }
 0x115   : > { %v1360_v56 = vpop.f32.mrf.mxu2 }
 0x116   : > { %v1433_v60 = vadd.f32 %v1360_v56, %v1127_v58  ;;  %v1259_v56 = vrot.slane %v3044_v11, 1 }
 0x117   : > { %v1667_v31 = vpop.f32.mrf.mxu0 }
 0x119   : > { %v1508_v27 = vpop.f32.mrf.mxu3  ;;  %v1131_v54 = vpop.f32.mrf.mxu1 }
 0x11a   : > { %v1581_v2 = vadd.f32 %v1508_v27, %v1433_v60  ;;  %2579 = vmatmul.msk.bf16.gmra.mxu2 %vm916_vm4, %v3545_v42  ;;  %v1132_v43 = vadd.f32 %v1131_v54, %v3478_v29 }
 0x11c   : > { %v3553_v51 = vadd.f32 %v1667_v31, %v1581_v2 }
 0x11d   : > { %v1363_v58 = vpop.f32.mrf.mxu2 }
 0x11e   : > { %2611 = vmatmul.msk.bf16.gmra.mxu3 %vm916_vm4, %v3027_v0  ;;  %v1434_v13 = vadd.f32 %v1363_v58, %v1130_v48  ;;  %v3566_v48 = vsel %vm1224_vm5, %v1258_v17, %v1259_v56  ;;  %v1261_v56 = vrot.slane %v3121_v40, 1 }
 0x11f   : > { %v1670_v52 = vpop.f32.mrf.mxu0 }
 0x121   : > { %v1511_v3 = vpop.f32.mrf.mxu3  ;;  %v1134_v39 = vpop.f32.mrf.mxu1 }
 0x122   : > { %2643 = vmatmul.msk.bf16.gmra.mxu0 %vm916_vm4, %v3058_v37  ;;  %v1582_v50 = vadd.f32 %v1511_v3, %v1434_v13  ;;  %v1135_v58 = vadd.f32 %v1134_v39, %v3352_v46 }
 0x124   : > { %2548 = vmatmul.msk.bf16.gmra.mxu1 %vm916_vm4, %v3027_v0  ;;  %v3563_v29 = vadd.f32 %v1670_v52, %v1582_v50 }
 0x125   : > { %v1365_v60 = vpop.f32.mrf.mxu2 }
 0x126   : > { %v1435_v31 = vadd.f32 %v1365_v60, %v1132_v43  ;;  %v1262_v60 = vrot.slane %v3131_v62, 1 }
 0x127   : > { %v1672_v7 = vpop.f32.mrf.mxu0 }
 0x129   : > { %v1513_v27 = vpop.f32.mrf.mxu3  ;;  %v1136_v54 = vpop.f32.mrf.mxu1 }
 0x12a   : > { %v1583_v2 = vadd.f32 %v1513_v27, %v1435_v31  ;;  %2580 = vmatmul.msk.bf16.gmra.mxu2 %vm916_vm4, %v3566_v48  ;;  %v1137_v46 = vadd.f32 %v1136_v54, %v3362_v20 }
 0x12c   : > { %v3571_v11 = vadd.f32 %v1672_v7, %v1583_v2  ;;  %v3585_v2 = vsel %vm1224_vm5, %v1261_v56, %v1262_v60 }
 0x12d   : > { %v1368_v13 = vpop.f32.mrf.mxu2  ;;  %4034 = vst [vmem:[#allocation32_spill] sm:$0xff] %v3585_v2 }
 0x12e   : > { %4032 = vst [vmem:[#allocation30_spill] sm:$0xff] %v3571_v11  ;;  %2612 = vmatmul.msk.bf16.gmra.mxu3 %vm916_vm4, %v3121_v40  ;;  %v1436_v52 = vadd.f32 %v1368_v13, %v1135_v58 }
 0x12f   : > { %v1675_v43 = vpop.f32.mrf.mxu0 }
 0x131   : > { %v1516_v3 = vpop.f32.mrf.mxu3  ;;  %v1139_v50 = vpop.f32.mrf.mxu1 }
 0x132   : > { %2644 = vmatmul.msk.bf16.gmra.mxu0 %vm916_vm4, %v3144_v26  ;;  %v1584_v17 = vadd.f32 %v1516_v3, %v1436_v52  ;;  %v1140_v62 = vadd.f32 %v1139_v50, %v3373_v57 }
 0x134   : > { %2549 = vmatmul.msk.bf16.gmra.mxu1 %vm916_vm4, %v3121_v40  ;;  %v3582_v39 = vadd.f32 %v1675_v43, %v1584_v17  ;;  %v2894_v17 = vld [vmem:[%s2967_s23 + $0x78] sm:$0xff]   ;;  %s2779_s23 = sshll.u32 %s4071_s13, 8 }
 0x135   : > { %v1370_v31 = vpop.f32.mrf.mxu2  ;;  %v2878_v57 = vunpack.c.l.b16 %v2894_v17  ;;  %s3787_s21 = scalar_lea.vmem %s3976_s3, %s2779_s23 }
 0x136   : > { %4033 = vst [vmem:[#allocation31_spill] sm:$0xff] %v3582_v39  ;;  %v1437_v7 = vadd.f32 %v1370_v31, %v1137_v46  ;;  %v1264_v31 = vrot.slane %v3201_v47, 1  ;;  %v545_v39 = vshll.u32 %v2894_v17, 16 }
 0x137   : > { %v1677_v27 = vpop.f32.mrf.mxu0 }
 0x139   : > { %v1518_v58 = vpop.f32.mrf.mxu3  ;;  %v1141_v13 = vpop.f32.mrf.mxu1 }
 0x13a   : > { %v1585_v52 = vadd.f32 %v1518_v58, %v1437_v7  ;;  %2581 = vmatmul.msk.bf16.gmra.mxu2 %vm916_vm4, %v3585_v2  ;;  %v1265_v7 = vrot.slane %v3208_v4, 1  ;;  %v1142_v50 = vadd.f32 %v1141_v13, %v3387_v16  ;;  %v2879_v58 = vunpack.c.h.b16 %v2894_v17 }
 0x13c   : > { %v3590_v20 = vadd.f32 %v1677_v27, %v1585_v52  ;;  %v542_v27 = vshrl.u32 %v2894_v17, 16  ;;  %v595_v4 = vpack.c.b16 %v2879_v58, %v2879_v58 }
 0x13d   : > { %v1373_v54 = vpop.f32.mrf.mxu2 }
 0x13e   : > { %4035 = vst [vmem:[#allocation33_spill] sm:$0xff] %v3590_v20  ;;  %2613 = vmatmul.msk.bf16.gmra.mxu3 %vm916_vm4, %v3201_v47  ;;  %v1438_v43 = vadd.f32 %v1373_v54, %v1140_v62 }
 0x13f   : > { %v1680_v3 = vpop.f32.mrf.mxu0 }
 0x141   : > { %v1521_v46 = vpop.f32.mrf.mxu3  ;;  %v1144_v56 = vpop.f32.mrf.mxu1 }
 0x142   : > { %2645 = vmatmul.msk.bf16.gmra.mxu0 %vm916_vm4, %v3224_v44  ;;  %v1586_v60 = vadd.f32 %v1521_v46, %v1438_v43  ;;  %v3605_v44 = vsel %vm1224_vm5, %v1264_v31, %v1265_v7  ;;  %v323_v43 = vpack.c.b16 %v2878_v57, %v2878_v57  ;;  %v544_v46 = vrot.slane %v542_v27, 7  ;;  %v4037_v31 = vld [vmem:[#allocation13_spill] sm:$0xff] }
 0x144   : > { %2550 = vmatmul.msk.bf16.gmra.mxu1 %vm916_vm4, %v3201_v47  ;;  %v3602_v52 = vadd.f32 %v1680_v3, %v1586_v60  ;;  %v370_v13 = vshrl.u32 %v323_v43, 16  ;;  %v1145_v3 = vadd.f32 %v1144_v56, %v3400_v59  ;;  %v547_v60 = vor.u32 %v545_v39, %v544_v46 }
 0x145   : > { %v1375_v62 = vpop.f32.mrf.mxu2  ;;  %v1267_v39 = vrot.slane %v4037_v31, 1 }
 0x146   : > { %4036 = vst [vmem:[#allocation34_spill] sm:$0xff] %v3602_v52  ;;  %v1439_v54 = vadd.f32 %v1375_v62, %v1142_v50  ;;  %v657_v52 = vshll.u32 %v595_v4, 16  ;;  %v3616_v57 = vsel %vm2980_vm3, %v370_v13, %v547_v60 }
 0x147   : > { %v1682_v20 = vpop.f32.mrf.mxu0  ;;  %v1610_v56 = vshll.u32 %v3616_v57, 16 }
 0x149   : > { %v1523_v11 = vpop.f32.mrf.mxu3  ;;  %v1146_v2 = vpop.f32.mrf.mxu1  ;;  %v1612_v60 = vrot.slane %v1610_v56, 1 }
 0x14a   : > { %v1587_v16 = vadd.f32 %v1523_v11, %v1439_v54  ;;  %2582 = vmatmul.msk.bf16.gmra.mxu2 %vm916_vm4, %v3605_v44  ;;  %v659_v11 = vrot.slane %v657_v52, 3  ;;  %v1147_v54 = vadd.f32 %v1146_v2, %v3417_v5 }
 0x14c   : > { %v3610_v50 = vadd.f32 %v1682_v20, %v1587_v16  ;;  %v1268_v20 = vrot.slane %v3272_v30, 1  ;;  %v3628_v52 = vsel %vm2980_vm3, %v544_v46, %v659_v11  ;;  %v1608_v30 = vshrl.u32 %v3616_v57, 16 }
 0x14d   : > { %v1378_v62 = vpop.f32.mrf.mxu2  ;;  %v1615_v5 = vshll.u32 %v3628_v52, 16 }
 0x14e   : > { %2614 = vmatmul.msk.bf16.gmra.mxu3 %vm916_vm4, %v4037_v31  ;;  %v1440_v7 = vadd.f32 %v1378_v62, %v1145_v3  ;;  %v3633_v3 = vsel %vm1224_vm5, %v1267_v39, %v1268_v20  ;;  %v1613_v19 = vor.u32 %v1612_v60, %v1608_v30 }
 0x14f   : > { %v1685_v17 = vpop.f32.mrf.mxu0  ;;  %v1617_v46 = vrot.slane %v1615_v5, 1 }
 0x151   : > { %v1526_v27 = vpop.f32.mrf.mxu3  ;;  %v1149_v58 = vpop.f32.mrf.mxu1  ;;  %v3645_v20 = vsel %vm711_vm2, %v1613_v19, %v1617_v46 }
 0x152   : > { %2646 = vmatmul.msk.bf16.gmra.mxu0 %vm916_vm4, %v3287_v53  ;;  %v1588_v59 = vadd.f32 %v1526_v27, %v1440_v7 }
 0x154   : > { %2551 = vmatmul.msk.bf16.gmra.mxu1 %vm916_vm4, %v4037_v31  ;;  %v3630_v43 = vadd.f32 %v1685_v17, %v1588_v59  ;;  %v1150_v17 = vadd.f32 %v1149_v58, %v3432_v24 }
 0x155   : > { %v1380_v4 = vpop.f32.mrf.mxu2 }
 0x156   : > { %v1441_v16 = vadd.f32 %v1380_v4, %v1147_v54 }
 0x157   : > { %v1687_v13 = vpop.f32.mrf.mxu0 }
 0x159   : > { %v1528_v2 = vpop.f32.mrf.mxu3  ;;  %v1151_v62 = vpop.f32.mrf.mxu1 }
 0x15a   : > { %v1589_v7 = vadd.f32 %v1528_v2, %v1441_v16  ;;  %2583 = vmatmul.msk.bf16.gmra.mxu2 %vm916_vm4, %v3633_v3  ;;  %v1152_v16 = vadd.f32 %v1151_v62, %v3458_v18 }
 0x15c   : > { %v3640_v11 = vadd.f32 %v1687_v13, %v1589_v7 }
 0x15d   : > { %v1383_v27 = vpop.f32.mrf.mxu2 }
 0x15e   : > { %2615 = vmatmul.msk.bf16.gmra.mxu3 %vm916_vm4, %v3616_v57  ;;  %v1442_v59 = vadd.f32 %v1383_v27, %v1150_v17 }
 0x15f   : > { %v1690_v39 = vpop.f32.mrf.mxu0 }
 0x161   : > { %v1531_v56 = vpop.f32.mrf.mxu3  ;;  %v1154_v54 = vpop.f32.mrf.mxu1 }
 0x162   : > { %2647 = vmatmul.msk.bf16.gmra.mxu0 %vm916_vm4, %v3645_v20  ;;  %v1590_v4 = vadd.f32 %v1531_v56, %v1442_v59  ;;  %v1155_v7 = vadd.f32 %v1154_v54, %v3364_v15 }
 0x164   : > { %2664 = vmatmul.msk.bf16.vlgmr.msra.gmra.mxu1 %vm916_vm4, %v3316_v63  ;;  %v3652_v24 = vadd.f32 %v1690_v39, %v1590_v4 }
 0x165   : > { %v1385_v58 = vpop.f32.mrf.mxu2 }
 0x166   : > { %v1443_v13 = vadd.f32 %v1385_v58, %v1152_v16 }
 0x167   : > { %v1692_v30 = vpop.f32.mrf.mxu0 }
 0x169   : > { %v1533_v60 = vpop.f32.mrf.mxu3  ;;  %v1156_v5 = vpop.f32.mrf.mxu1 }
 0x16a   : > { %v1591_v2 = vadd.f32 %v1533_v60, %v1443_v13  ;;  %2696 = vmatmul.msk.bf16.vlgmr.msra.gmra.mxu2 %vm916_vm4, %v3062_v38  ;;  %v1157_v59 = vadd.f32 %v1156_v5, %v3377_v45 }
 0x16c   : > { %v3657_v19 = vadd.f32 %v1692_v30, %v1591_v2 }
 0x16d   : > { %v1388_v46 = vpop.f32.mrf.mxu2 }
 0x16e   : > { %2728 = vmatmul.msk.bf16.vlgmr.msra.gmra.mxu3 %vm916_vm4, %v3086_v8  ;;  %v1444_v18 = vadd.f32 %v1388_v46, %v1155_v7 }
 0x16f   : > { %v1695_v63 = vpop.f32.mrf.mxu0 }
 0x171   : > { %v1536_v62 = vpop.f32.mrf.mxu3  ;;  %v1159_v17 = vpop.f32.mrf.mxu1 }
 0x172   : > { %2760 = vmatmul.msk.bf16.vlgmr.msra.gmra.mxu0 %vm916_vm4, %v3303_v9  ;;  %v1592_v27 = vadd.f32 %v1536_v62, %v1444_v18  ;;  %v1160_v16 = vadd.f32 %v1159_v17, %v3392_v10 }
 0x174   : > { %2665 = vmatmul.msk.bf16.gmra.mxu1 %vm916_vm4, %v3303_v9  ;;  %v3666_v38 = vadd.f32 %v1695_v63, %v1592_v27 }
 0x175   : > { %v1390_v15 = vpop.f32.mrf.mxu2 }
 0x176   : > { %v1445_v39 = vadd.f32 %v1390_v15, %v1157_v59 }
 0x177   : > { %v1697_v56 = vpop.f32.mrf.mxu0 }
 0x179   : > { %v1538_v54 = vpop.f32.mrf.mxu3  ;;  %v1161_v8 = vpop.f32.mrf.mxu1 }
 0x17a   : > { %v1593_v4 = vadd.f32 %v1538_v54, %v1445_v39  ;;  %2697 = vmatmul.msk.bf16.gmra.mxu2 %vm916_vm4, %v3282_v36  ;;  %v1162_v2 = vadd.f32 %v1161_v8, %v3404_v22  ;;  %v4038_v22 = vld [vmem:[#allocation3_spill] sm:$0xff]  ;;  %v4040_v8 = vld [vmem:[#allocation22_spill] sm:$0xff] }
 0x17c   : > { %v3671_v58 = vadd.f32 %v1697_v56, %v1593_v4  ;;  %v4039_v56 = vld [vmem:[#allocation14_spill] sm:$0xff] }
 0x17d   : > { %v1393_v13 = vpop.f32.mrf.mxu2 }
 0x17e   : > { %2729 = vmatmul.msk.bf16.gmra.mxu3 %vm916_vm4, %v3294_v1  ;;  %v1446_v9 = vadd.f32 %v1393_v13, %v1160_v16 }
 0x17f   : > { %v1700_v45 = vpop.f32.mrf.mxu0 }
 0x181   : > { %v1541_v30 = vpop.f32.mrf.mxu3  ;;  %v1164_v60 = vpop.f32.mrf.mxu1 }
 0x182   : > { %2761 = vmatmul.msk.bf16.gmra.mxu0 %vm916_vm4, %v3348_v32  ;;  %v1594_v5 = vadd.f32 %v1541_v30, %v1446_v9  ;;  %v1165_v62 = vadd.f32 %v1164_v60, %v3423_v6  ;;  %v4041_v60 = vld [vmem:[#allocation5_spill] sm:$0xff] }
 0x184   : > { %2666 = vmatmul.msk.bf16.gmra.mxu1 %vm916_vm4, %v3348_v32  ;;  %v3680_v36 = vadd.f32 %v1700_v45, %v1594_v5  ;;  %v4042_v5 = vld [vmem:[#allocation25_spill] sm:$0xff] }
 0x185   : > { %v1395_v10 = vpop.f32.mrf.mxu2 }
 0x186   : > { %v1447_v7 = vadd.f32 %v1395_v10, %v1162_v2 }
 0x187   : > { %v1702_v46 = vpop.f32.mrf.mxu0 }
 0x189   : > { %v1543_v18 = vpop.f32.mrf.mxu3  ;;  %v1166_v1 = vpop.f32.mrf.mxu1 }
 0x18a   : > { %v1595_v63 = vadd.f32 %v1543_v18, %v1447_v7  ;;  %2698 = vmatmul.msk.bf16.gmra.mxu2 %vm916_vm4, %v2994_v35  ;;  %v1167_v4 = vadd.f32 %v1166_v1, %v4040_v8 }
 0x18c   : > { %v3685_v17 = vadd.f32 %v1702_v46, %v1595_v63  ;;  %v4043_v46 = vld [vmem:[#allocation6_spill] sm:$0xff] }
 0x18d   : > { %v1398_v27 = vpop.f32.mrf.mxu2 }
 0x18e   : > { %2730 = vmatmul.msk.bf16.gmra.mxu3 %vm916_vm4, %v4038_v22  ;;  %v1448_v32 = vadd.f32 %v1398_v27, %v1165_v62  ;;  %v4044_v27 = vld [vmem:[#allocation17_spill] sm:$0xff] }
 0x18f   : > { %v1705_v59 = vpop.f32.mrf.mxu0 }
 0x191   : > { %v1546_v15 = vpop.f32.mrf.mxu3  ;;  %v1169_v39 = vpop.f32.mrf.mxu1 }
 0x192   : > { %2762 = vmatmul.msk.bf16.gmra.mxu0 %vm916_vm4, %v4039_v56  ;;  %v1596_v54 = vadd.f32 %v1546_v15, %v1448_v32  ;;  %v1170_v2 = vadd.f32 %v1169_v39, %v4042_v5  ;;  %v4045_v32 = vld [vmem:[#allocation27_spill] sm:$0xff] }
 0x194   : > { %2667 = vmatmul.msk.bf16.gmra.mxu1 %vm916_vm4, %v4039_v56  ;;  %v3694_v35 = vadd.f32 %v1705_v59, %v1596_v54 }
 0x195   : > { %v1400_v6 = vpop.f32.mrf.mxu2 }
 0x196   : > { %v1449_v16 = vadd.f32 %v1400_v6, %v1167_v4 }
 0x197   : > { %v1707_v13 = vpop.f32.mrf.mxu0 }
 0x199   : > { %v1548_v9 = vpop.f32.mrf.mxu3  ;;  %v1171_v45 = vpop.f32.mrf.mxu1 }
 0x19a   : > { %v1597_v30 = vadd.f32 %v1548_v9, %v1449_v16  ;;  %2699 = vmatmul.msk.bf16.gmra.mxu2 %vm916_vm4, %v4041_v60  ;;  %v1172_v59 = vadd.f32 %v1171_v45, %v4045_v32  ;;  %v4046_v16 = vld [vmem:[#allocation8_spill] sm:$0xff]  ;;  %v4048_v45 = vld [vmem:[#allocation9_spill] sm:$0xff] }
 0x19c   : > { %v3699_v10 = vadd.f32 %v1707_v13, %v1597_v30  ;;  %v4047_v13 = vld [vmem:[#allocation15_spill] sm:$0xff] }
 0x19d   : > { %v1403_v7 = vpop.f32.mrf.mxu2 }
 0x19e   : > { %2731 = vmatmul.msk.bf16.gmra.mxu3 %vm916_vm4, %v4043_v46  ;;  %v1450_v18 = vadd.f32 %v1403_v7, %v1170_v2 }
 0x19f   : > { %v1710_v1 = vpop.f32.mrf.mxu0 }
 0x1a1   : > { %v1551_v63 = vpop.f32.mrf.mxu3  ;;  %v1174_v62 = vpop.f32.mrf.mxu1 }
 0x1a2   : > { %2763 = vmatmul.msk.bf16.gmra.mxu0 %vm916_vm4, %v4044_v27  ;;  %v1598_v22 = vadd.f32 %v1551_v63, %v1450_v18  ;;  %v1175_v9 = vadd.f32 %v1174_v62, %v4047_v13  ;;  %v4049_v18 = vld [vmem:[#allocation20_spill] sm:$0xff] }
 0x1a3   : > { %v4050_v63 = vld [vmem:[#allocation16_spill] sm:$0xff] }
 0x1a4   : > { %2668 = vmatmul.msk.bf16.gmra.mxu1 %vm916_vm4, %v4044_v27  ;;  %v3708_v15 = vadd.f32 %v1710_v1, %v1598_v22 }
 0x1a5   : > { %v1405_v39 = vpop.f32.mrf.mxu2 }
 0x1a6   : > { %v1451_v56 = vadd.f32 %v1405_v39, %v1172_v59 }
 0x1a7   : > { %v1712_v54 = vpop.f32.mrf.mxu0 }
 0x1a9   : > { %v1553_v8 = vpop.f32.mrf.mxu3  ;;  %v1176_v4 = vpop.f32.mrf.mxu1 }
 0x1aa   : > { %v1599_v6 = vadd.f32 %v1553_v8, %v1451_v56  ;;  %2700 = vmatmul.msk.bf16.gmra.mxu2 %vm916_vm4, %v4046_v16  ;;  %v1177_v27 = vadd.f32 %v1176_v4, %v4050_v63  ;;  %v4051_v8 = vld [vmem:[#allocation10_spill] sm:$0xff]  ;;  %v4053_v4 = vld [vmem:[#allocation12_spill] sm:$0xff] }
 0x1ac   : > { %v3713_v30 = vadd.f32 %v1712_v54, %v1599_v6  ;;  %v4052_v6 = vld [vmem:[#allocation18_spill] sm:$0xff] }
 0x1ad   : > { %v1408_v60 = vpop.f32.mrf.mxu2 }
 0x1ae   : > { %2732 = vmatmul.msk.bf16.gmra.mxu3 %vm916_vm4, %v4048_v45  ;;  %v1452_v5 = vadd.f32 %v1408_v60, %v1175_v9 }
 0x1af   : > { %v1715_v2 = vpop.f32.mrf.mxu0 }
 0x1b1   : > { %v1556_v7 = vpop.f32.mrf.mxu3  ;;  %v1179_v46 = vpop.f32.mrf.mxu1 }
 0x1b2   : > { %2764 = vmatmul.msk.bf16.gmra.mxu0 %vm916_vm4, %v4049_v18  ;;  %v1600_v1 = vadd.f32 %v1556_v7, %v1452_v5  ;;  %v1180_v16 = vadd.f32 %v1179_v46, %v4052_v6  ;;  %v4054_v7 = vld [vmem:[#allocation23_spill] sm:$0xff]  ;;  %v4057_v6 = vld [vmem:[#allocation21_spill] sm:$0xff] }
 0x1b4   : > { %2669 = vmatmul.msk.bf16.gmra.mxu1 %vm916_vm4, %v4049_v18  ;;  %v3722_v62 = vadd.f32 %v1715_v2, %v1600_v1  ;;  %v4055_v1 = vld [vmem:[#allocation19_spill] sm:$0xff] }
 0x1b5   : > { %v1410_v22 = vpop.f32.mrf.mxu2 }
 0x1b6   : > { %v1453_v32 = vadd.f32 %v1410_v22, %v1177_v27 }
 0x1b7   : > { %v1717_v59 = vpop.f32.mrf.mxu0 }
 0x1b9   : > { %v1558_v39 = vpop.f32.mrf.mxu3  ;;  %v1181_v56 = vpop.f32.mrf.mxu1 }
 0x1ba   : > { %v1601_v54 = vadd.f32 %v1558_v39, %v1453_v32  ;;  %2701 = vmatmul.msk.bf16.gmra.mxu2 %vm916_vm4, %v4051_v8  ;;  %v1182_v63 = vadd.f32 %v1181_v56, %v4055_v1  ;;  %v4056_v8 = vld [vmem:[#allocation2_spill] sm:$0xff]  ;;  %v4058_v56 = vld [vmem:[#allocation4_spill] sm:$0xff] }
 0x1bc   : > { %v3727_v13 = vadd.f32 %v1717_v59, %v1601_v54 }
 0x1bd   : > { %v1413_v9 = vpop.f32.mrf.mxu2 }
 0x1be   : > { %2733 = vmatmul.msk.bf16.gmra.mxu3 %vm916_vm4, %v4053_v4  ;;  %v1454_v60 = vadd.f32 %v1413_v9, %v1180_v16 }
 0x1bf   : > { %v1720_v45 = vpop.f32.mrf.mxu0 }
 0x1c1   : > { %v1561_v5 = vpop.f32.mrf.mxu3  ;;  %v1184_v2 = vpop.f32.mrf.mxu1 }
 0x1c2   : > { %2765 = vmatmul.msk.bf16.gmra.mxu0 %vm916_vm4, %v4054_v7  ;;  %v1602_v18 = vadd.f32 %v1561_v5, %v1454_v60  ;;  %v1185_v16 = vadd.f32 %v1184_v2, %v4057_v6 }
 0x1c4   : > { %2670 = vmatmul.msk.bf16.gmra.mxu1 %vm916_vm4, %v4054_v7  ;;  %v3736_v46 = vadd.f32 %v1720_v45, %v1602_v18  ;;  %v4059_v18 = vld [vmem:[#allocation28_spill] sm:$0xff] }
 0x1c5   : > { %v1415_v27 = vpop.f32.mrf.mxu2 }
 0x1c6   : > { %v1455_v22 = vadd.f32 %v1415_v27, %v1182_v63  ;;  %v4060_v63 = vld [vmem:[#allocation24_spill] sm:$0xff] }
 0x1c7   : > { %v1722_v32 = vpop.f32.mrf.mxu0 }
 0x1c9   : > { %v1563_v59 = vpop.f32.mrf.mxu3  ;;  %v1186_v39 = vpop.f32.mrf.mxu1 }
 0x1ca   : > { %v1603_v54 = vadd.f32 %v1563_v59, %v1455_v22  ;;  %2702 = vmatmul.msk.bf16.gmra.mxu2 %vm916_vm4, %v4056_v8  ;;  %v1187_v27 = vadd.f32 %v1186_v39, %v4060_v63  ;;  %v4062_v39 = vld [vmem:[#allocation7_spill] sm:$0xff] }
 0x1cc   : > { %v3741_v9 = vadd.f32 %v1722_v32, %v1603_v54 }
 0x1cd   : > { %v1418_v4 = vpop.f32.mrf.mxu2 }
 0x1ce   : > { %2734 = vmatmul.msk.bf16.gmra.mxu3 %vm916_vm4, %v4058_v56  ;;  %v1456_v60 = vadd.f32 %v1418_v4, %v1185_v16  ;;  %v4061_v16 = vld [vmem:[#allocation26_spill] sm:$0xff] }
 0x1cf   : > { %v1725_v45 = vpop.f32.mrf.mxu0 }
 0x1d1   : > { %v1566_v5 = vpop.f32.mrf.mxu3  ;;  %v1189_v7 = vpop.f32.mrf.mxu1 }
 0x1d2   : > { %2766 = vmatmul.msk.bf16.gmra.mxu0 %vm916_vm4, %v4059_v18  ;;  %v1604_v1 = vadd.f32 %v1566_v5, %v1456_v60  ;;  %v1190_v4 = vadd.f32 %v1189_v7, %v4061_v16 }
 0x1d4   : > { %2671 = vmatmul.msk.bf16.gmra.mxu1 %vm916_vm4, %v4059_v18  ;;  %v3750_v2 = vadd.f32 %v1725_v45, %v1604_v1 }
 0x1d5   : > { %v1420_v22 = vpop.f32.mrf.mxu2 }
 0x1d6   : > { %v1457_v32 = vadd.f32 %v1420_v22, %v1187_v27  ;;  %v4063_v27 = vld [vmem:[#allocation29_spill] sm:$0xff] }
 0x1d7   : > { %v1727_v59 = vpop.f32.mrf.mxu0 }
 0x1d9   : > { %v1568_v54 = vpop.f32.mrf.mxu3  ;;  %v1191_v8 = vpop.f32.mrf.mxu1 }
 0x1da   : > { %v1605_v6 = vadd.f32 %v1568_v54, %v1457_v32  ;;  %2703 = vmatmul.msk.bf16.gmra.mxu2 %vm916_vm4, %v3093_v14  ;;  %v1192_v22 = vadd.f32 %v1191_v8, %v4063_v27 }
 0x1dc   : > { %v3755_v56 = vadd.f32 %v1727_v59, %v1605_v6 }
 0x1dd   : > { %v1423_v60 = vpop.f32.mrf.mxu2 }
 0x1de   : > { %2735 = vmatmul.msk.bf16.gmra.mxu3 %vm916_vm4, %v4062_v39  ;;  %v1458_v5 = vadd.f32 %v1423_v60, %v1190_v4 }
 0x1df   : > { %v1730_v45 = vpop.f32.mrf.mxu0 }
 0x1e1   : > { %v1571_v18 = vpop.f32.mrf.mxu3  ;;  %v1808_v1 = vpop.f32.mrf.mxu1 }
 0x1e2   : > { %2767 = vmatmul.msk.bf16.gmra.mxu0 %vm916_vm4, %v3498_v55  ;;  %v1606_v63 = vadd.f32 %v1571_v18, %v1458_v5  ;;  %v1888_v4 = vadd.f32 %v1808_v1, %v3495_v49 }
 0x1e4   : > { %2672 = vmatmul.msk.bf16.gmra.mxu1 %vm916_vm4, %v3498_v55  ;;  %v3764_v14 = vadd.f32 %v1730_v45, %v1606_v63 }
 0x1e5   : > { %v1425_v7 = vpop.f32.mrf.mxu2 }
 0x1e6   : > { %v1459_v32 = vadd.f32 %v1425_v7, %v1192_v22 }
 0x1e7   : > { %v1732_v59 = vpop.f32.mrf.mxu0 }
 0x1e9   : > { %v1573_v54 = vpop.f32.mrf.mxu3  ;;  %v1810_v6 = vpop.f32.mrf.mxu1 }
 0x1ea   : > { %v1607_v16 = vadd.f32 %v1573_v54, %v1459_v32  ;;  %2704 = vmatmul.msk.bf16.gmra.mxu2 %vm916_vm4, %v3179_v21  ;;  %v3779_v21 = vld [vmem:[%s3975_s2] ss:$0 sm:$0xff]  ;;  %v1889_v1 = vadd.f32 %v1810_v6, %v3503_v28 }
 0x1ec   : > { %v3769_v60 = vadd.f32 %v1732_v59, %v1607_v16 }
 0x1ed   : > { %v1953_v8 = vpop.f32.mrf.mxu2 }
 0x1ee   : > { %2736 = vmatmul.msk.bf16.gmra.mxu3 %vm916_vm4, %v3211_v12  ;;  %v2033_v55 = vadd.f32 %v1953_v8, %v1888_v4 }
 0x1ef   : > { %v2243_v39 = vpop.f32.mrf.mxu0 }
 0x1f1   : > { %v2098_v5 = vpop.f32.mrf.mxu3  ;;  %v1813_v45 = vpop.f32.mrf.mxu1 }
 0x1f2   : > { %2768 = vmatmul.msk.bf16.gmra.mxu0 %vm916_vm4, %v3517_v33  ;;  %v2178_v18 = vadd.f32 %v2098_v5, %v2033_v55  ;;  %v1890_v59 = vadd.f32 %v1813_v45, %v3514_v61 }
 0x1f4   : > { %v2323_v49 = vadd.f32 %v2243_v39, %v2178_v18  ;;  %2673 = vmatmul.msk.bf16.gmra.mxu1 %vm916_vm4, %v3517_v33 }
 0x1f5   : > { %v1955_v12 = vpop.f32.mrf.mxu2 }
 0x1f6   : > { %v2359_v63 = vadd.f32 %v3779_v21, %v2323_v49  ;;  %v2034_v27 = vadd.f32 %v1955_v12, %v1889_v1 }
 0x1f7   : > { %v2245_v22 = vpop.f32.mrf.mxu0 }
 0x1f8   : > { %2392 = vst.msk [vmem:[%s3787_s21] sm:$0xff] %vm2391_vm6, %v2359_v63 }
 0x1f9   : > { %v2100_v7 = vpop.f32.mrf.mxu3  ;;  %v1815_v28 = vpop.f32.mrf.mxu1 }
 0x1fa   : > { %v2179_v32 = vadd.f32 %v2100_v7, %v2034_v27  ;;  %2705 = vmatmul.msk.bf16.gmra.mxu2 %vm916_vm4, %v3241_v23  ;;  %v1891_v61 = vadd.f32 %v1815_v28, %v3522_v34 }
 0x1fc   : > { %v2324_v33 = vadd.f32 %v2245_v22, %v2179_v32 }
 0x1fd   : > { %v1958_v54 = vpop.f32.mrf.mxu2 }
 0x1fe   : > { %v2360_v6 = vadd.f32 %v3779_v21, %v2324_v33  ;;  %2737 = vmatmul.msk.bf16.gmra.mxu3 %vm916_vm4, %v3275_v25  ;;  %v2035_v16 = vadd.f32 %v1958_v54, %v1890_v59 }
 0x1ff   : > { %v2248_v4 = vpop.f32.mrf.mxu0 }
 0x200   : > { %2393 = vst.msk [vmem:[%s3787_s21 + $0x8] sm:$0xff] %vm2391_vm6, %v2360_v6 }
 0x201   : > { %v2103_v8 = vpop.f32.mrf.mxu3  ;;  %v1818_v55 = vpop.f32.mrf.mxu1 }
 0x202   : > { %2769 = vmatmul.msk.bf16.gmra.mxu0 %vm916_vm4, %v3545_v42  ;;  %v2180_v23 = vadd.f32 %v2103_v8, %v2035_v16  ;;  %v1892_v34 = vadd.f32 %v1818_v55, %v3542_v41 }
 0x204   : > { %v2325_v39 = vadd.f32 %v2248_v4, %v2180_v23  ;;  %2674 = vmatmul.msk.bf16.gmra.mxu1 %vm916_vm4, %v3545_v42 }
 0x205   : > { %v1960_v5 = vpop.f32.mrf.mxu2 }
 0x206   : > { %v2361_v25 = vadd.f32 %v3779_v21, %v2325_v39  ;;  %v2036_v45 = vadd.f32 %v1960_v5, %v1891_v61 }
 0x207   : > { %v2250_v18 = vpop.f32.mrf.mxu0 }
 0x208   : > { %2394 = vst.msk [vmem:[%s3787_s21 + $0x10] sm:$0xff] %vm2391_vm6, %v2361_v25 }
 0x209   : > { %v2105_v49 = vpop.f32.mrf.mxu3  ;;  %v1820_v1 = vpop.f32.mrf.mxu1 }
 0x20a   : > { %v2181_v12 = vadd.f32 %v2105_v49, %v2036_v45  ;;  %2706 = vmatmul.msk.bf16.gmra.mxu2 %vm916_vm4, %v3027_v0  ;;  %v1893_v41 = vadd.f32 %v1820_v1, %v3553_v51  ;;  %v4064_v45 = vld [vmem:[#allocation32_spill] sm:$0xff]  ;;  %v4065_v49 = vld [vmem:[#allocation30_spill] sm:$0xff] }
 0x20c   : > { %v2326_v63 = vadd.f32 %v2250_v18, %v2181_v12 }
 0x20d   : > { %v1963_v27 = vpop.f32.mrf.mxu2 }
 0x20e   : > { %v2362_v42 = vadd.f32 %v3779_v21, %v2326_v63  ;;  %2738 = vmatmul.msk.bf16.gmra.mxu3 %vm916_vm4, %v3058_v37  ;;  %v2037_v22 = vadd.f32 %v1963_v27, %v1892_v34 }
 0x20f   : > { %v2253_v7 = vpop.f32.mrf.mxu0 }
 0x210   : > { %2395 = vst.msk [vmem:[%s3787_s21 + $0x18] sm:$0xff] %vm2391_vm6, %v2362_v42 }
 0x211   : > { %v2108_v28 = vpop.f32.mrf.mxu3  ;;  %v1823_v32 = vpop.f32.mrf.mxu1 }
 0x212   : > { %2770 = vmatmul.msk.bf16.gmra.mxu0 %vm916_vm4, %v3566_v48  ;;  %v2182_v0 = vadd.f32 %v2108_v28, %v2037_v22  ;;  %v1894_v51 = vadd.f32 %v1823_v32, %v3563_v29 }
 0x214   : > { %v2327_v33 = vadd.f32 %v2253_v7, %v2182_v0  ;;  %2675 = vmatmul.msk.bf16.gmra.mxu1 %vm916_vm4, %v3566_v48  ;;  %v4066_v7 = vld [vmem:[#allocation31_spill] sm:$0xff] }
 0x215   : > { %v1965_v59 = vpop.f32.mrf.mxu2 }
 0x216   : > { %v2363_v37 = vadd.f32 %v3779_v21, %v2327_v33  ;;  %v2038_v54 = vadd.f32 %v1965_v59, %v1893_v41  ;;  %v4067_v33 = vld [vmem:[#allocation11_spill] sm:$0xff] }
 0x217   : > { %v2255_v6 = vpop.f32.mrf.mxu0 }
 0x218   : > { %2396 = vst.msk [vmem:[%s3787_s21 + $0x20] sm:$0xff] %vm2391_vm6, %v2363_v37 }
 0x219   : > { %v2110_v16 = vpop.f32.mrf.mxu3  ;;  %v1825_v4 = vpop.f32.mrf.mxu1 }
 0x21a   : > { %v2183_v8 = vadd.f32 %v2110_v16, %v2038_v54  ;;  %2707 = vmatmul.msk.bf16.gmra.mxu2 %vm916_vm4, %v3121_v40  ;;  %v1895_v29 = vadd.f32 %v1825_v4, %v4065_v49  ;;  %v4068_v16 = vld [vmem:[#allocation33_spill] sm:$0xff] }
 0x21c   : > { %v2328_v55 = vadd.f32 %v2255_v6, %v2183_v8 }
 0x21d   : > { %v1968_v23 = vpop.f32.mrf.mxu2 }
 0x21e   : > { %v2364_v48 = vadd.f32 %v3779_v21, %v2328_v55  ;;  %2739 = vmatmul.msk.bf16.gmra.mxu3 %vm916_vm4, %v3144_v26  ;;  %v2039_v39 = vadd.f32 %v1968_v23, %v1894_v51 }
 0x21f   : > { %v2258_v61 = vpop.f32.mrf.mxu0 }
 0x220   : > { %2397 = vst.msk [vmem:[%s3787_s21 + $0x28] sm:$0xff] %vm2391_vm6, %v2364_v48 }
 0x221   : > { %v2113_v5 = vpop.f32.mrf.mxu3  ;;  %v1828_v25 = vpop.f32.mrf.mxu1 }
 0x222   : > { %2771 = vmatmul.msk.bf16.gmra.mxu0 %vm916_vm4, %v4064_v45  ;;  %v2184_v40 = vadd.f32 %v2113_v5, %v2039_v39  ;;  %v1896_v28 = vadd.f32 %v1828_v25, %v4066_v7  ;;  %v4069_v25 = vld [vmem:[#allocation34_spill] sm:$0xff] }
 0x224   : > { %v2329_v18 = vadd.f32 %v2258_v61, %v2184_v40  ;;  %2676 = vmatmul.msk.bf16.gmra.mxu1 %vm916_vm4, %v4064_v45 }
 0x225   : > { %v1970_v1 = vpop.f32.mrf.mxu2 }
 0x226   : > { %v2365_v26 = vadd.f32 %v3779_v21, %v2329_v18  ;;  %v2040_v12 = vadd.f32 %v1970_v1, %v1895_v29 }
 0x227   : > { %v2260_v63 = vpop.f32.mrf.mxu0 }
 0x228   : > { %2398 = vst.msk [vmem:[%s3787_s21 + $0x30] sm:$0xff] %vm2391_vm6, %v2365_v26 }
 0x229   : > { %v2115_v34 = vpop.f32.mrf.mxu3  ;;  %v1830_v27 = vpop.f32.mrf.mxu1 }
 0x22a   : > { %v2185_v42 = vadd.f32 %v2115_v34, %v2040_v12  ;;  %2708 = vmatmul.msk.bf16.gmra.mxu2 %vm916_vm4, %v3201_v47  ;;  %v1897_v4 = vadd.f32 %v1830_v27, %v4068_v16 }
 0x22c   : > { %v2330_v22 = vadd.f32 %v2260_v63, %v2185_v42 }
 0x22d   : > { %v1973_v32 = vpop.f32.mrf.mxu2 }
 0x22e   : > { %v2366_v0 = vadd.f32 %v3779_v21, %v2330_v22  ;;  %2740 = vmatmul.msk.bf16.gmra.mxu3 %vm916_vm4, %v4067_v33  ;;  %v2041_v41 = vadd.f32 %v1973_v32, %v1896_v28 }
 0x22f   : > { %v2263_v59 = vpop.f32.mrf.mxu0 }
 0x230   : > { %2399 = vst.msk [vmem:[%s3787_s21 + $0x38] sm:$0xff] %vm2391_vm6, %v2366_v0  ;;  %v1769_v0 = vrot.slane %v3616_v57, 1 }
 0x231   : > { %v2118_v37 = vpop.f32.mrf.mxu3  ;;  %v1833_v54 = vpop.f32.mrf.mxu1 }
 0x232   : > { %2772 = vmatmul.msk.bf16.gmra.mxu0 %vm916_vm4, %v3605_v44  ;;  %v2186_v47 = vadd.f32 %v2118_v37, %v2041_v41  ;;  %v1898_v45 = vadd.f32 %v1833_v54, %v4069_v25 }
 0x234   : > { %v2331_v6 = vadd.f32 %v2263_v59, %v2186_v47  ;;  %2677 = vmatmul.msk.bf16.gmra.mxu1 %vm916_vm4, %v3605_v44 }
 0x235   : > { %v1975_v8 = vpop.f32.mrf.mxu2 }
 0x236   : > { %v2367_v55 = vadd.f32 %v3779_v21, %v2331_v6  ;;  %v2042_v51 = vadd.f32 %v1975_v8, %v1897_v4 }
 0x237   : > { %v2265_v23 = vpop.f32.mrf.mxu0 }
 0x238   : > { %2400 = vst.msk [vmem:[%s3787_s21 + $0x40] sm:$0xff] %vm2391_vm6, %v2367_v55 }
 0x239   : > { %v2120_v48 = vpop.f32.mrf.mxu3  ;;  %v1835_v39 = vpop.f32.mrf.mxu1 }
 0x23a   : > { %v2187_v61 = vadd.f32 %v2120_v48, %v2042_v51  ;;  %2709 = vmatmul.msk.bf16.gmra.mxu2 %vm916_vm4, %v4037_v31  ;;  %v1899_v63 = vadd.f32 %v1835_v39, %v3610_v50  ;;  %v1770_v50 = vrot.slane %v3628_v52, 1 }
 0x23c   : > { %v2332_v5 = vadd.f32 %v2265_v23, %v2187_v61  ;;  %v1771_v6 = vsel %vm1224_vm5, %v1769_v0, %v1770_v50 }
 0x23d   : > { %v1978_v40 = vpop.f32.mrf.mxu2 }
 0x23e   : > { %v2368_v44 = vadd.f32 %v3779_v21, %v2332_v5  ;;  %2741 = vmatmul.msk.bf16.gmra.mxu3 %vm916_vm4, %v3287_v53  ;;  %v2043_v18 = vadd.f32 %v1978_v40, %v1898_v45 }
 0x23f   : > { %v2268_v49 = vpop.f32.mrf.mxu0 }
 0x240   : > { %2401 = vst.msk [vmem:[%s3787_s21 + $0x48] sm:$0xff] %vm2391_vm6, %v2368_v44 }
 0x241   : > { %v2123_v29 = vpop.f32.mrf.mxu3  ;;  %v1838_v1 = vpop.f32.mrf.mxu1 }
 0x242   : > { %2773 = vmatmul.msk.bf16.gmra.mxu0 %vm916_vm4, %v3633_v3  ;;  %v2188_v26 = vadd.f32 %v2123_v29, %v2043_v18  ;;  %v1900_v41 = vadd.f32 %v1838_v1, %v3630_v43 }
 0x244   : > { %v2333_v12 = vadd.f32 %v2268_v49, %v2188_v26  ;;  %2678 = vmatmul.msk.bf16.gmra.mxu1 %vm916_vm4, %v3633_v3 }
 0x245   : > { %v1980_v34 = vpop.f32.mrf.mxu2 }
 0x246   : > { %v2369_v27 = vadd.f32 %v3779_v21, %v2333_v12  ;;  %v2044_v42 = vadd.f32 %v1980_v34, %v1899_v63 }
 0x247   : > { %v2270_v22 = vpop.f32.mrf.mxu0 }
 0x248   : > { %2402 = vst.msk [vmem:[%s3787_s21 + $0x50] sm:$0xff] %vm2391_vm6, %v2369_v27 }
 0x249   : > { %v2125_v7 = vpop.f32.mrf.mxu3  ;;  %v1840_v28 = vpop.f32.mrf.mxu1 }
 0x24a   : > { %v2189_v32 = vadd.f32 %v2125_v7, %v2044_v42  ;;  %2710 = vmatmul.msk.bf16.gmra.mxu2 %vm916_vm4, %v3616_v57  ;;  %v1901_v43 = vadd.f32 %v1840_v28, %v3640_v11 }
 0x24c   : > { %v2334_v33 = vadd.f32 %v2270_v22, %v2189_v32 }
 0x24d   : > { %v1983_v59 = vpop.f32.mrf.mxu2 }
 0x24e   : > { %v2370_v37 = vadd.f32 %v3779_v21, %v2334_v33  ;;  %2742 = vmatmul.msk.bf16.gmra.mxu3 %vm916_vm4, %v3645_v20  ;;  %v2045_v54 = vadd.f32 %v1983_v59, %v1900_v41 }
 0x24f   : > { %v2273_v47 = vpop.f32.mrf.mxu0 }
 0x250   : > { %2403 = vst.msk [vmem:[%s3787_s21 + $0x58] sm:$0xff] %vm2391_vm6, %v2370_v37 }
 0x251   : > { %v2128_v16 = vpop.f32.mrf.mxu3  ;;  %v1843_v57 = vpop.f32.mrf.mxu1 }
 0x252   : > { %2774 = vmatmul.msk.bf16.gmra.mxu0 %vm916_vm4, %v1771_v6  ;;  %v2190_v52 = vadd.f32 %v2128_v16, %v2045_v54  ;;  %v1902_v5 = vadd.f32 %v1843_v57, %v3652_v24 }
 0x254   : > { %v2335_v4 = vadd.f32 %v2273_v47, %v2190_v52  ;;  %2679 = vmatmul.msk.bf16.gmra.mxu1 %vm916_vm4, %v1771_v6 }
 0x255   : > { %v1985_v8 = vpop.f32.mrf.mxu2 }
 0x256   : > { %v2371_v20 = vadd.f32 %v3779_v21, %v2335_v4  ;;  %v2046_v55 = vadd.f32 %v1985_v8, %v1901_v43 }
 0x257   : > { %v2275_v51 = vpop.f32.mrf.mxu0 }
 0x258   : > { %2404 = vst.msk [vmem:[%s3787_s21 + $0x60] sm:$0xff] %vm2391_vm6, %v2371_v20 }
 0x259   : > { %v2130_v23 = vpop.f32.mrf.mxu3  ;;  %v1845_v48 = vpop.f32.mrf.mxu1 }
 0x25a   : > { %v2191_v39 = vadd.f32 %v2130_v23, %v2046_v55  ;;  %2711 = vmatmul.msk.bf16.gmra.mxu2 %vm916_vm4, %v4037_v31  ;;  %v1903_v24 = vadd.f32 %v1845_v48, %v3657_v19 }
 0x25c   : > { %v2336_v61 = vadd.f32 %v2275_v51, %v2191_v39 }
 0x25d   : > { %v1988_v11 = vpop.f32.mrf.mxu2 }
 0x25e   : > { %v2372_v25 = vadd.f32 %v3779_v21, %v2336_v61  ;;  %2743 = vmatmul.msk.bf16.gmra.mxu3 %vm916_vm4, %v3287_v53  ;;  %v2047_v45 = vadd.f32 %v1988_v11, %v1902_v5 }
 0x25f   : > { %v2278_v40 = vpop.f32.mrf.mxu0 }
 0x260   : > { %2405 = vst.msk [vmem:[%s3787_s21 + $0x68] sm:$0xff] %vm2391_vm6, %v2372_v25 }
 0x261   : > { %v2133_v44 = vpop.f32.mrf.mxu3  ;;  %v1848_v18 = vpop.f32.mrf.mxu1 }
 0x262   : > { %2775 = vmatmul.msk.bf16.gmra.mxu0 %vm916_vm4, %v3633_v3  ;;  %v2192_v31 = vadd.f32 %v2133_v44, %v2047_v45  ;;  %v1904_v42 = vadd.f32 %v1848_v18, %v3666_v38 }
 0x264   : > { %v2337_v49 = vadd.f32 %v2278_v40, %v2192_v31 }
 0x265   : > { %v1990_v29 = vpop.f32.mrf.mxu2 }
 0x266   : > { %v2373_v1 = vadd.f32 %v3779_v21, %v2337_v49  ;;  %v2048_v26 = vadd.f32 %v1990_v29, %v1903_v24 }
 0x267   : > { %v2280_v12 = vpop.f32.mrf.mxu0 }
 0x268   : > { %2406 = vst.msk [vmem:[%s3787_s21 + $0x70] sm:$0xff] %vm2391_vm6, %v2373_v1 }
 0x269   : > { %v2135_v53 = vpop.f32.mrf.mxu3  ;;  %v1850_v63 = vpop.f32.mrf.mxu1 }
 0x26a   : > { %v2193_v34 = vadd.f32 %v2135_v53, %v2048_v26  ;;  %v1905_v33 = vadd.f32 %v1850_v63, %v3671_v58 }
 0x26c   : > { %v2338_v27 = vadd.f32 %v2280_v12, %v2193_v34 }
 0x26d   : > { %v1993_v3 = vpop.f32.mrf.mxu2 }
 0x26e   : > { %v2374_v22 = vadd.f32 %v3779_v21, %v2338_v27  ;;  %v2049_v7 = vadd.f32 %v1993_v3, %v1904_v42 }
 0x26f   : > { %v2283_v28 = vpop.f32.mrf.mxu0 }
 0x270   : > { %2407 = vst.msk [vmem:[%s3787_s21 + $0x78] sm:$0xff] %vm2391_vm6, %v2374_v22 }
 0x271   : > { %v2138_v19 = vpop.f32.mrf.mxu3  ;;  %v1853_v32 = vpop.f32.mrf.mxu1 }
 0x272   : > { %v2194_v0 = vadd.f32 %v2138_v19, %v2049_v7  ;;  %v1906_v57 = vadd.f32 %v1853_v32, %v3680_v36 }
 0x274   : > { %v2339_v50 = vadd.f32 %v2283_v28, %v2194_v0 }
 0x275   : > { %v1995_v41 = vpop.f32.mrf.mxu2 }
 0x276   : > { %v2375_v59 = vadd.f32 %v3779_v21, %v2339_v50  ;;  %v2050_v37 = vadd.f32 %v1995_v41, %v1905_v33 }
 0x277   : > { %v2285_v54 = vpop.f32.mrf.mxu0 }
 0x278   : > { %2408 = vst.msk [vmem:[%s3787_s21 + $0x80] sm:$0xff] %vm2391_vm6, %v2375_v59 }
 0x279   : > { %v2140_v38 = vpop.f32.mrf.mxu3  ;;  %v1855_v47 = vpop.f32.mrf.mxu1 }
 0x27a   : > { %v2195_v6 = vadd.f32 %v2140_v38, %v2050_v37  ;;  %v1907_v23 = vadd.f32 %v1855_v47, %v3685_v17 }
 0x27c   : > { %v2340_v16 = vadd.f32 %v2285_v54, %v2195_v6 }
 0x27d   : > { %v1998_v52 = vpop.f32.mrf.mxu2 }
 0x27e   : > { %v2376_v4 = vadd.f32 %v3779_v21, %v2340_v16  ;;  %v2051_v43 = vadd.f32 %v1998_v52, %v1906_v57 }
 0x27f   : > { %v2288_v8 = vpop.f32.mrf.mxu0 }
 0x280   : > { %2409 = vst.msk [vmem:[%s3787_s21 + $0x88] sm:$0xff] %vm2391_vm6, %v2376_v4 }
 0x281   : > { %v2143_v58 = vpop.f32.mrf.mxu3  ;;  %v1858_v20 = vpop.f32.mrf.mxu1 }
 0x282   : > { %v2196_v55 = vadd.f32 %v2143_v58, %v2051_v43  ;;  %v1908_v40 = vadd.f32 %v1858_v20, %v3694_v35 }
 0x284   : > { %v2341_v51 = vadd.f32 %v2288_v8, %v2196_v55 }
 0x285   : > { %v2000_v48 = vpop.f32.mrf.mxu2 }
 0x286   : > { %v2377_v39 = vadd.f32 %v3779_v21, %v2341_v51  ;;  %v2052_v61 = vadd.f32 %v2000_v48, %v1907_v23 }
 0x287   : > { %v2290_v5 = vpop.f32.mrf.mxu0 }
 0x288   : > { %2410 = vst.msk [vmem:[%s3787_s21 + $0x90] sm:$0xff] %vm2391_vm6, %v2377_v39 }
 0x289   : > { %v2145_v36 = vpop.f32.mrf.mxu3  ;;  %v1860_v11 = vpop.f32.mrf.mxu1 }
 0x28a   : > { %v2197_v25 = vadd.f32 %v2145_v36, %v2052_v61  ;;  %v1909_v26 = vadd.f32 %v1860_v11, %v3699_v10 }
 0x28c   : > { %v2342_v45 = vadd.f32 %v2290_v5, %v2197_v25 }
 0x28d   : > { %v2003_v44 = vpop.f32.mrf.mxu2 }
 0x28e   : > { %v2378_v18 = vadd.f32 %v3779_v21, %v2342_v45  ;;  %v2053_v31 = vadd.f32 %v2003_v44, %v1908_v40 }
 0x28f   : > { %v2293_v49 = vpop.f32.mrf.mxu0 }
 0x290   : > { %2411 = vst.msk [vmem:[%s3787_s21 + $0x98] sm:$0xff] %vm2391_vm6, %v2378_v18 }
 0x291   : > { %v2148_v17 = vpop.f32.mrf.mxu3  ;;  %v1863_v24 = vpop.f32.mrf.mxu1 }
 0x292   : > { %v2198_v29 = vadd.f32 %v2148_v17, %v2053_v31  ;;  %v1910_v22 = vadd.f32 %v1863_v24, %v3708_v15 }
 0x294   : > { %v2343_v1 = vadd.f32 %v2293_v49, %v2198_v29 }
 0x295   : > { %v2005_v12 = vpop.f32.mrf.mxu2 }
 0x296   : > { %v2379_v53 = vadd.f32 %v3779_v21, %v2343_v1  ;;  %v2054_v63 = vadd.f32 %v2005_v12, %v1909_v26 }
 0x297   : > { %v2295_v34 = vpop.f32.mrf.mxu0 }
 0x298   : > { %2412 = vst.msk [vmem:[%s3787_s21 + $0xa0] sm:$0xff] %vm2391_vm6, %v2379_v53 }
 0x299   : > { %v2150_v35 = vpop.f32.mrf.mxu3  ;;  %v1865_v27 = vpop.f32.mrf.mxu1 }
 0x29a   : > { %v2199_v42 = vadd.f32 %v2150_v35, %v2054_v63  ;;  %v1911_v41 = vadd.f32 %v1865_v27, %v3713_v30 }
 0x29c   : > { %v2344_v3 = vadd.f32 %v2295_v34, %v2199_v42 }
 0x29d   : > { %v2008_v7 = vpop.f32.mrf.mxu2 }
 0x29e   : > { %v2380_v28 = vadd.f32 %v3779_v21, %v2344_v3  ;;  %v2055_v19 = vadd.f32 %v2008_v7, %v1910_v22 }
 0x29f   : > { %v2298_v32 = vpop.f32.mrf.mxu0 }
 0x2a0   : > { %2413 = vst.msk [vmem:[%s3787_s21 + $0xa8] sm:$0xff] %vm2391_vm6, %v2380_v28 }
 0x2a1   : > { %v2153_v10 = vpop.f32.mrf.mxu3  ;;  %v1868_v0 = vpop.f32.mrf.mxu1 }
 0x2a2   : > { %v2200_v50 = vadd.f32 %v2153_v10, %v2055_v19  ;;  %v1912_v57 = vadd.f32 %v1868_v0, %v3722_v62 }
 0x2a4   : > { %v2345_v33 = vadd.f32 %v2298_v32, %v2200_v50 }
 0x2a5   : > { %v2010_v59 = vpop.f32.mrf.mxu2 }
 0x2a6   : > { %v2381_v37 = vadd.f32 %v3779_v21, %v2345_v33  ;;  %v2056_v54 = vadd.f32 %v2010_v59, %v1911_v41 }
 0x2a7   : > { %v2300_v38 = vpop.f32.mrf.mxu0 }
 0x2a8   : > { %2414 = vst.msk [vmem:[%s3787_s21 + $0xb0] sm:$0xff] %vm2391_vm6, %v2381_v37 }
 0x2a9   : > { %v2155_v15 = vpop.f32.mrf.mxu3  ;;  %v1870_v47 = vpop.f32.mrf.mxu1 }
 0x2aa   : > { %v2201_v6 = vadd.f32 %v2155_v15, %v2056_v54  ;;  %v1913_v51 = vadd.f32 %v1870_v47, %v3727_v13 }
 0x2ac   : > { %v2346_v16 = vadd.f32 %v2300_v38, %v2201_v6 }
 0x2ad   : > { %v2013_v52 = vpop.f32.mrf.mxu2 }
 0x2ae   : > { %v2382_v4 = vadd.f32 %v3779_v21, %v2346_v16  ;;  %v2057_v43 = vadd.f32 %v2013_v52, %v1912_v57 }
 0x2af   : > { %v2303_v8 = vpop.f32.mrf.mxu0 }
 0x2b0   : > { %2415 = vst.msk [vmem:[%s3787_s21 + $0xb8] sm:$0xff] %vm2391_vm6, %v2382_v4 }
 0x2b1   : > { %v2158_v30 = vpop.f32.mrf.mxu3  ;;  %v1873_v58 = vpop.f32.mrf.mxu1 }
 0x2b2   : > { %v2202_v20 = vadd.f32 %v2158_v30, %v2057_v43  ;;  %v1914_v25 = vadd.f32 %v1873_v58, %v3736_v46 }
 0x2b4   : > { %v2347_v55 = vadd.f32 %v2303_v8, %v2202_v20 }
 0x2b5   : > { %v2015_v23 = vpop.f32.mrf.mxu2 }
 0x2b6   : > { %v2383_v48 = vadd.f32 %v3779_v21, %v2347_v55  ;;  %v2058_v39 = vadd.f32 %v2015_v23, %v1913_v51 }
 0x2b7   : > { %v2305_v61 = vpop.f32.mrf.mxu0 }
 0x2b8   : > { %2416 = vst.msk [vmem:[%s3787_s21 + $0xc0] sm:$0xff] %vm2391_vm6, %v2383_v48 }
 0x2b9   : > { %v2160_v62 = vpop.f32.mrf.mxu3  ;;  %v1875_v5 = vpop.f32.mrf.mxu1 }
 0x2ba   : > { %v2203_v36 = vadd.f32 %v2160_v62, %v2058_v39  ;;  %v1915_v24 = vadd.f32 %v1875_v5, %v3741_v9 }
 0x2bc   : > { %v2348_v11 = vadd.f32 %v2305_v61, %v2203_v36 }
 0x2bd   : > { %v2018_v45 = vpop.f32.mrf.mxu2 }
 0x2be   : > { %v2384_v40 = vadd.f32 %v3779_v21, %v2348_v11  ;;  %v2059_v44 = vadd.f32 %v2018_v45, %v1914_v25 }
 0x2bf   : > { %v2308_v18 = vpop.f32.mrf.mxu0 }
 0x2c0   : > { %2417 = vst.msk [vmem:[%s3787_s21 + $0xc8] sm:$0xff] %vm2391_vm6, %v2384_v40 }
 0x2c1   : > { %v2163_v13 = vpop.f32.mrf.mxu3  ;;  %v1878_v49 = vpop.f32.mrf.mxu1 }
 0x2c2   : > { %v2204_v31 = vadd.f32 %v2163_v13, %v2059_v44  ;;  %v1916_v34 = vadd.f32 %v1878_v49, %v3750_v2 }
 0x2c4   : > { %v2349_v17 = vadd.f32 %v2308_v18, %v2204_v31 }
 0x2c5   : > { %v2020_v29 = vpop.f32.mrf.mxu2 }
 0x2c6   : > { %v2385_v1 = vadd.f32 %v3779_v21, %v2349_v17  ;;  %v2060_v26 = vadd.f32 %v2020_v29, %v1915_v24 }
 0x2c7   : > { %v2310_v12 = vpop.f32.mrf.mxu0 }
 0x2c8   : > { %2418 = vst.msk [vmem:[%s3787_s21 + $0xd0] sm:$0xff] %vm2391_vm6, %v2385_v1 }
 0x2c9   : > { %v2165_v46 = vpop.f32.mrf.mxu3  ;;  %v1880_v35 = vpop.f32.mrf.mxu1 }
 0x2ca   : > { %v2205_v53 = vadd.f32 %v2165_v46, %v2060_v26  ;;  %v1917_v19 = vadd.f32 %v1880_v35, %v3755_v56 }
 0x2cc   : > { %v2350_v63 = vadd.f32 %v2310_v12, %v2205_v53 }
 0x2cd   : > { %v2023_v27 = vpop.f32.mrf.mxu2 }
 0x2ce   : > { %v2386_v42 = vadd.f32 %v3779_v21, %v2350_v63  ;;  %v2061_v3 = vadd.f32 %v2023_v27, %v1916_v34 }
 0x2cf   : > { %v2313_v22 = vpop.f32.mrf.mxu0 }
 0x2d0   : > { %2419 = vst.msk [vmem:[%s3787_s21 + $0xd8] sm:$0xff] %vm2391_vm6, %v2386_v42 }
 0x2d1   : > { %v2168_v9 = vpop.f32.mrf.mxu3  ;;  %v1883_v2 = vpop.f32.mrf.mxu1 }
 0x2d2   : > { %v2206_v7 = vadd.f32 %v2168_v9, %v2061_v3  ;;  %v1918_v37 = vadd.f32 %v1883_v2, %v3764_v14 }
 0x2d4   : > { %v2351_v28 = vadd.f32 %v2313_v22, %v2206_v7 }
 0x2d5   : > { %v2025_v32 = vpop.f32.mrf.mxu2 }
 0x2d6   : > { %v2387_v10 = vadd.f32 %v3779_v21, %v2351_v28  ;;  %v2062_v0 = vadd.f32 %v2025_v32, %v1917_v19 }
 0x2d7   : > { %v2315_v50 = vpop.f32.mrf.mxu0 }
 0x2d8   : > { %2420 = vst.msk [vmem:[%s3787_s21 + $0xe0] sm:$0xff] %vm2391_vm6, %v2387_v10 }
 0x2d9   : > { %v2170_v33 = vpop.f32.mrf.mxu3  ;;  %v1885_v56 = vpop.f32.mrf.mxu1 }
 0x2da   : > { %v2207_v41 = vadd.f32 %v2170_v33, %v2062_v0  ;;  %v1919_v52 = vadd.f32 %v1885_v56, %v3769_v60 }
 0x2dc   : > { %v2352_v59 = vadd.f32 %v2315_v50, %v2207_v41 }
 0x2dd   : > { %v2028_v54 = vpop.f32.mrf.mxu2 }
 0x2de   : > { %v2388_v38 = vadd.f32 %v3779_v21, %v2352_v59  ;;  %v2063_v15 = vadd.f32 %v2028_v54, %v1918_v37 }
 0x2df   : > { %v2318_v47 = vpop.f32.mrf.mxu0 }
 0x2e0   : > { %2421 = vst.msk [vmem:[%s3787_s21 + $0xe8] sm:$0xff] %vm2391_vm6, %v2388_v38 }
 0x2e1   : > { %v2173_v6 = vpop.f32.mrf.mxu3 }
 0x2e2   : > { %v2208_v16 = vadd.f32 %v2173_v6, %v2063_v15 }
 0x2e4   : > { %v2353_v57 = vadd.f32 %v2318_v47, %v2208_v16 }
 0x2e5   : > { %v2030_v4 = vpop.f32.mrf.mxu2 }
 0x2e6   : > { %v2389_v43 = vadd.f32 %v3779_v21, %v2353_v57  ;;  %v2064_v8 = vadd.f32 %v2030_v4, %v1919_v52 }
 0x2e7   : > { %v2320_v58 = vpop.f32.mrf.mxu0 }
 0x2e8   : > { %2422 = vst.msk [vmem:[%s3787_s21 + $0xf0] sm:$0xff] %vm2391_vm6, %v2389_v43 }
 0x2e9   : > { %v2175_v14 = vpop.f32.mrf.mxu3 }
 0x2ea   : > { %v2209_v30 = vadd.f32 %v2175_v14, %v2064_v8 }
 0x2ec   : > { %v2354_v20 = vadd.f32 %v2320_v58, %v2209_v30 }
 0x2ee   : > { %v2390_v55 = vadd.f32 %v3779_v21, %v2354_v20 }
 0x2f0   : > { %2423 = vst.msk [vmem:[%s3787_s21 + $0xf8] sm:$0xff] %vm2391_vm6, %v2390_v55 }
 0x2f1 PF: > { %s13_s12 = sadd.s32 1, %s2922_s12  }
 0x2f2   : > { %p10_p4 = scmp.ge.s32.totalorder %s13_s12, 4  }
 0x2f4   :  { %12 = sbr.rel (!%p10_p4) target bundleno = 1 (0x1), region = 62 }

</bundles_post_ra>
